<compile_context>
chip_gen: v7x
topology: tpu7x:2x2x1
jax: 0.10.0
libtpu: 0.0.40
codegen_flags: <defaults>
</compile_context>

<pallas_src>
import numpy as np
import jax
import jax.numpy as jnp
from jax import lax
from jax.experimental import pallas as pl
from jax.experimental.pallas import tpu as pltpu


def causal_ml_kernel(x_ref, wx_ref, wh_ref, b_ref,
                     fa_ref, fab_ref,
                     fb_ref, fbb_ref,
                     phi_ref, phib_ref, exp2_ref,
                     mean_ref, alphas_ref, betas_ref):
    T, B, _ = x_ref.shape
    Dn = wh_ref.shape[0]

    # Loop-invariant operands: load / broadcast exactly once (hoisted out of
    # the unrolled loop; JAX does not CSE broadcast_in_dim).
    wx = wx_ref[...]                                          # (D, 4*Dn)
    wh = wh_ref[...]                                          # (Dn, 4*Dn)
    bias = jnp.broadcast_to(b_ref[...], (B, 4 * Dn))          # (B, 4*Dn)
    fa = fa_ref[...]                                          # (Dn, Dn)
    fab = jnp.broadcast_to(fab_ref[...], (B, Dn))             # (B, Dn)

    h = jnp.zeros((B, Dn), jnp.float32)
    c = jnp.zeros((B, Dn), jnp.float32)
    a_sum = jnp.zeros((B, Dn), jnp.float32)
    g_acc = jnp.zeros((B, Dn), jnp.float32)
    a_steps = []

    # Fully unrolled recurrence (T is small); no stores inside the loop.
    for t in range(T):
        xt = x_ref[t]                                         # (B, D)
        # Two MXU dots per step, columns laid out [ j | i | f | o ].
        pre = (jnp.dot(xt, wx, preferred_element_type=jnp.float32)
               + jnp.dot(h, wh, preferred_element_type=jnp.float32)
               + bias)                                        # (B, 4*Dn)
        # One tanh over all four gate tiles; i/f/o weights were pre-scaled by
        # 0.5 on the host so sigmoid(y) == 0.5*tanh(0.5*y) + 0.5.
        t_all = jnp.tanh(pre)
        j_t = t_all[:, 0:Dn]
        ifo = 0.5 * t_all[:, Dn:] + 0.5                       # (B, 3*Dn)
        i_t = ifo[:, 0:Dn]
        f_t = ifo[:, Dn:2 * Dn]
        o_t = ifo[:, 2 * Dn:3 * Dn]
        c = c * f_t + i_t * j_t
        h = o_t * jnp.tanh(c)

        # Online alpha attention in wide (B, Dn) form: one dot per step
        # (expand fused into fa on the host, columns repeated n per feature).
        a_wide = jnp.exp(jnp.tanh(
            jnp.dot(h, fa, preferred_element_type=jnp.float32) + fab))
        a_steps.append(a_wide)
        a_sum = a_sum + a_wide
        g_acc = g_acc + a_wide * h

    h_final = h

    # Epilogue (off the serial recurrence): exact divides for the normalizers
    # that feed `mean`.
    inv_a = 1.0 / a_sum                                       # (B, Dn)
    g_flat = g_acc * inv_a

    # Single lane-dense store of the normalized alphas: (B, T, Dn).
    alphas_ref[...] = jnp.stack(a_steps, axis=1) * inv_a[:, None, :]

    # Betas: stacked [g | h] head, one dot.
    gh = jnp.concatenate([g_flat, h_final], axis=1)           # (B, 2*Dn)
    b_pre = (jnp.dot(gh, fb_ref[...], preferred_element_type=jnp.float32)
             + fbb_ref[...])                                  # (B, D)
    e_b = jnp.exp(jnp.tanh(b_pre))
    b_norm = e_b / jnp.sum(e_b, axis=1, keepdims=True)
    betas_ref[...] = b_norm

    # mean = sum_d beta_d * Phi([g_d, h_d]); since sum_d beta_d == 1 the Phi
    # bias passes through, so one expand dot + one stacked Phi dot suffice.
    bw2 = jnp.dot(b_norm, exp2_ref[...],
                  preferred_element_type=jnp.float32)         # (B, 2*Dn)
    mean_ref[...] = (
        jnp.dot(bw2 * gh, phi_ref[...], preferred_element_type=jnp.float32)
        + phib_ref[...])


def prepare_causal_ml_weights(params):
    """One-time host-side weight fusion (call once, outside the per-call jit)."""
    f32 = jnp.float32
    D, n = params['W_j'].shape[0], params['W_j'].shape[1]
    Dn = D * n
    out_dim = params['Phi_w'].shape[0]
    eye = jnp.eye(D, dtype=f32)

    # --- fused recurrent weights, column layout [ j | i | f | o ] ---
    wj = params['W_j'].astype(f32)                            # (D, n, n)
    uj = params['U_j'][:, 0, :].astype(f32)                   # (D, n)
    wj_bd = (eye[:, None, :, None] * wj[:, :, None, :]).reshape(Dn, Dn)
    uj_bs = (eye[:, :, None] * uj[:, None, :]).reshape(D, Dn)

    def split_gate(w):
        w = w.astype(f32)
        # torch Linear: y = inp @ w.T + b with inp = cat([x_t (D), h_flat (Dn)])
        return jnp.transpose(w[:, :D]), jnp.transpose(w[:, D:])   # (D,Dn),(Dn,Dn)

    wix, wih = split_gate(params['W_i_w'])
    wfx, wfh = split_gate(params['W_f_w'])
    wox, woh = split_gate(params['W_o_w'])

    # i/f/o columns pre-scaled by 0.5 -> sigmoid(y) = 0.5*tanh(0.5*y) + 0.5.
    wx_all = jnp.concatenate([uj_bs, 0.5 * wix, 0.5 * wfx, 0.5 * wox], axis=1)
    wh_all = jnp.concatenate([wj_bd, 0.5 * wih, 0.5 * wfh, 0.5 * woh], axis=1)
    b_all = jnp.concatenate(
        [params['b_j'].reshape(1, Dn),
         0.5 * params['W_i_b'].reshape(1, Dn),
         0.5 * params['W_f_b'].reshape(1, Dn),
         0.5 * params['W_o_b'].reshape(1, Dn)], axis=1).astype(f32)   # (1, 4*Dn)

    # --- alpha attention, expand fused into the weight (wide form) ---
    fa = params['F_alpha_n'][:, :, 0].astype(f32)             # (D, n)
    fa_bd = (eye[:, None, :] * fa[:, :, None]).reshape(Dn, D) # (Dn, D)
    expand = jnp.repeat(eye, n, axis=1)                       # (D, Dn) 0/1 blocks
    fa_wide = fa_bd @ expand                                  # (Dn, Dn)
    fab_wide = jnp.repeat(
        params['F_alpha_n_b'].reshape(D).astype(f32), n).reshape(1, Dn)

    # --- beta / Phi heads, stacked over [g | h] ---
    fbg = params['F_beta_w'][0, :n].astype(f32)
    fbh = params['F_beta_w'][0, n:].astype(f32)
    fbg_bd = (eye[:, None, :] * fbg[None, :, None]).reshape(Dn, D)
    fbh_bd = (eye[:, None, :] * fbh[None, :, None]).reshape(Dn, D)
    fb_stack = jnp.concatenate([fbg_bd, fbh_bd], axis=0)      # (2*Dn, D)
    fbb = params['F_beta_b'].reshape(1, 1).astype(f32)

    phig_t = jnp.tile(jnp.transpose(params['Phi_w'][:, :n].astype(f32)), (D, 1))
    phih_t = jnp.tile(jnp.transpose(params['Phi_w'][:, n:].astype(f32)), (D, 1))
    phi_stack = jnp.concatenate([phig_t, phih_t], axis=0)     # (2*Dn, out)
    phib = params['Phi_b'].reshape(1, out_dim).astype(f32)

    exp2 = jnp.concatenate([expand, expand], axis=1)          # (D, 2*Dn)

    return dict(wx=wx_all, wh=wh_all, b=b_all, fa=fa_wide, fab=fab_wide,
                fb=fb_stack, fbb=fbb, phi=phi_stack, phib=phib, exp2=exp2)


def causal_ml_forward(x, prep):
    B, T, D = x.shape
    Dn = prep['wh'].shape[0]
    n = Dn // D
    out_dim = prep['phi'].shape[1]
    f32 = jnp.float32

    x_tm = jnp.transpose(x, (1, 0, 2)).astype(f32)            # (T, B, D) time-major

    args = (x_tm, prep['wx'], prep['wh'], prep['b'],
            prep['fa'], prep['fab'],
            prep['fb'], prep['fbb'],
            prep['phi'], prep['phib'], prep['exp2'])

    in_specs = [pl.BlockSpec(memory_space=pltpu.MemorySpace.VMEM) for _ in args]
    out_specs = tuple(pl.BlockSpec(memory_space=pltpu.MemorySpace.VMEM)
                      for _ in range(3))

    mean, alphas_wide, betas_bd = pl.pallas_call(
        causal_ml_kernel,
        out_shape=(jax.ShapeDtypeStruct((B, out_dim), f32),   # mean
                   jax.ShapeDtypeStruct((B, T, Dn), f32),     # alphas (wide, lane-dense)
                   jax.ShapeDtypeStruct((B, D), f32)),        # betas
        in_specs=in_specs,
        out_specs=out_specs,
    )(*args)

    alphas = alphas_wide[:, :, ::n][..., None]                # (B, T, D, 1)
    betas = betas_bd[..., None]                               # (B, D, 1)
    return mean, alphas, betas


def init_params(key, input_dim, output_dim, n_units, init_std=0.02):
    D, n = input_dim, n_units
    ks = jax.random.split(key, 16)
    fan_gate = D * (n + 1)
    bg = 1.0 / np.sqrt(fan_gate)
    b2 = 1.0 / np.sqrt(2 * n)
    u = lambda k, shape, b: jax.random.uniform(k, shape, jnp.float32, -b, b)
    g = lambda k, shape: jax.random.normal(k, shape, jnp.float32) * init_std
    return dict(
        U_j=g(ks[0], (D, 1, n)),
        W_j=g(ks[1], (D, n, n)),
        b_j=g(ks[2], (D, n)),
        W_i_w=u(ks[3], (D * n, fan_gate), bg), W_i_b=u(ks[4], (D * n,), bg),
        W_f_w=u(ks[5], (D * n, fan_gate), bg), W_f_b=u(ks[6], (D * n,), bg),
        W_o_w=u(ks[7], (D * n, fan_gate), bg), W_o_b=u(ks[8], (D * n,), bg),
        F_alpha_n=g(ks[9], (D, n, 1)),
        F_alpha_n_b=g(ks[10], (D, 1)),
        F_beta_w=u(ks[11], (1, 2 * n), b2), F_beta_b=u(ks[12], (1,), b2),
        Phi_w=u(ks[13], (output_dim, 2 * n), b2), Phi_b=u(ks[14], (output_dim,), b2),
    )


def causal_ml_reference(x, p):
    # Pure-JAX transcription of the PyTorch forward (dropout=0 path).
    B, T, D = x.shape
    n = p['W_j'].shape[1]
    h = jnp.zeros((B, D, n), jnp.float32)
    c = jnp.zeros((B, D * n), jnp.float32)
    outs = []
    for t in range(T):
        xt = x[:, t, :]
        j = jnp.tanh(jnp.einsum('bij,ijk->bik', h, p['W_j'])
                     + jnp.einsum('bij,jik->bjk', xt[:, None, :], p['U_j'])
                     + p['b_j'])
        inp = jnp.concatenate([xt, h.reshape(B, -1)], axis=1)
        i_t = jax.nn.sigmoid(inp @ p['W_i_w'].T + p['W_i_b'])
        f_t = jax.nn.sigmoid(inp @ p['W_f_w'].T + p['W_f_b'])
        o_t = jax.nn.sigmoid(inp @ p['W_o_w'].T + p['W_o_b'])
        c = c * f_t + i_t * j.reshape(B, -1)
        h = (o_t * jnp.tanh(c)).reshape(B, D, n)
        outs.append(h)
    outputs = jnp.stack(outs, axis=1)                      # (B, T, D, n)
    alphas = jnp.tanh(jnp.einsum('btij,ijk->btik', outputs, p['F_alpha_n'])
                      + p['F_alpha_n_b'])
    alphas = jnp.exp(alphas)
    alphas = alphas / jnp.sum(alphas, axis=1, keepdims=True)
    g_n = jnp.sum(alphas * outputs, axis=1)                # (B, D, n)
    hg = jnp.concatenate([g_n, h], axis=2)                 # (B, D, 2n)
    mu = hg @ p['Phi_w'].T + p['Phi_b']
    betas = jnp.exp(jnp.tanh(hg @ p['F_beta_w'].T + p['F_beta_b']))
    betas = betas / jnp.sum(betas, axis=1, keepdims=True)
    mean = jnp.sum(betas * mu, axis=1)
    return mean, alphas, betas


if __name__ == "__main__":
    B, T, D, n_units, out_dim = 2, 8, 4, 32, 2
    key = jax.random.PRNGKey(0)
    kx, kp = jax.random.split(key)
    x = jax.random.normal(kx, (B, T, D), jnp.float32)
    params = init_params(kp, D, out_dim, n_units)

    # Weight fusion happens once, outside the per-call jitted forward.
    prep = prepare_causal_ml_weights(params)
    prep = jax.tree_util.tree_map(jax.block_until_ready, prep)

    fwd = jax.jit(causal_ml_forward)
    mean, alphas, betas = fwd(x, prep)
    jax.block_until_ready((mean, alphas, betas))

    mean_r, alphas_r, betas_r = causal_ml_reference(x, params)
    np.testing.assert_allclose(np.asarray(mean), np.asarray(mean_r), rtol=5e-3, atol=5e-4)
    np.testing.assert_allclose(np.asarray(alphas), np.asarray(alphas_r), rtol=5e-3, atol=5e-4)
    np.testing.assert_allclose(np.asarray(betas), np.asarray(betas_r), rtol=5e-3, atol=5e-4)

    print("KERNEL_OK")
</pallas_src>

<mosaic_0001>
module attributes {stable_mosaic.version = 11 : i64} {
  func.func @causal_ml_kernel(%arg0: memref<8x2x4xf32, #tpu.memory_space<vmem>>, %arg1: memref<4x512xf32, #tpu.memory_space<vmem>>, %arg2: memref<128x512xf32, #tpu.memory_space<vmem>>, %arg3: memref<1x512xf32, #tpu.memory_space<vmem>>, %arg4: memref<128x128xf32, #tpu.memory_space<vmem>>, %arg5: memref<1x128xf32, #tpu.memory_space<vmem>>, %arg6: memref<256x4xf32, #tpu.memory_space<vmem>>, %arg7: memref<1x1xf32, #tpu.memory_space<vmem>>, %arg8: memref<256x2xf32, #tpu.memory_space<vmem>>, %arg9: memref<1x2xf32, #tpu.memory_space<vmem>>, %arg10: memref<4x256xf32, #tpu.memory_space<vmem>>, %arg11: memref<2x2xf32, #tpu.memory_space<vmem>>, %arg12: memref<2x8x128xf32, #tpu.memory_space<vmem>>, %arg13: memref<2x4xf32, #tpu.memory_space<vmem>>) attributes {dimension_semantics = [], scalar_prefetch = 0 : i64, scratch_operands = 0 : i64, tpu.core_type = #tpu.core_type<tc>} {
    %c0 = arith.constant 0 : index
    %c0_0 = arith.constant 0 : index
    %0 = vector.load %arg1[%c0, %c0_0] : memref<4x512xf32, #tpu.memory_space<vmem>>, vector<4x512xf32>
    %c0_1 = arith.constant 0 : index
    %c0_2 = arith.constant 0 : index
    %1 = vector.load %arg2[%c0_1, %c0_2] : memref<128x512xf32, #tpu.memory_space<vmem>>, vector<128x512xf32>
    %c0_3 = arith.constant 0 : index
    %c0_4 = arith.constant 0 : index
    %2 = vector.load %arg3[%c0_3, %c0_4] : memref<1x512xf32, #tpu.memory_space<vmem>>, vector<1x512xf32>
    %3 = vector.shape_cast %2 : vector<1x512xf32> to vector<1x512xf32>
    %4 = vector.broadcast %3 : vector<1x512xf32> to vector<2x512xf32>
    %c0_5 = arith.constant 0 : index
    %c0_6 = arith.constant 0 : index
    %5 = vector.load %arg4[%c0_5, %c0_6] : memref<128x128xf32, #tpu.memory_space<vmem>>, vector<128x128xf32>
    %c0_7 = arith.constant 0 : index
    %c0_8 = arith.constant 0 : index
    %6 = vector.load %arg5[%c0_7, %c0_8] : memref<1x128xf32, #tpu.memory_space<vmem>>, vector<1x128xf32>
    %7 = vector.shape_cast %6 : vector<1x128xf32> to vector<1x128xf32>
    %8 = vector.broadcast %7 : vector<1x128xf32> to vector<2x128xf32>
    %cst = arith.constant 0.000000e+00 : f32
    %9 = vector.broadcast %cst : f32 to vector<2x128xf32>
    %cst_9 = arith.constant 0.000000e+00 : f32
    %10 = vector.broadcast %cst_9 : f32 to vector<2x128xf32>
    %cst_10 = arith.constant 0.000000e+00 : f32
    %11 = vector.broadcast %cst_10 : f32 to vector<2x128xf32>
    %cst_11 = arith.constant 0.000000e+00 : f32
    %12 = vector.broadcast %cst_11 : f32 to vector<2x128xf32>
    %c0_12 = arith.constant 0 : index
    %c0_13 = arith.constant 0 : index
    %c0_14 = arith.constant 0 : index
    %13 = vector.load %arg0[%c0_12, %c0_13, %c0_14] : memref<8x2x4xf32, #tpu.memory_space<vmem>>, vector<1x2x4xf32>
    %14 = vector.shape_cast %13 : vector<1x2x4xf32> to vector<2x4xf32>
    %cst_15 = arith.constant dense<0.000000e+00> : vector<2x512xf32>
    %15 = tpu.matmul %14, %0, %cst_15 {dimension_numbers = #tpu.dot_dimension_numbers<[1], [0], [0], [1], [0, 0, 1, 1], [], []>} : vector<2x4xf32>, vector<4x512xf32>, vector<2x512xf32> -> vector<2x512xf32>
    %cst_16 = arith.constant dense<0.000000e+00> : vector<2x512xf32>
    %16 = tpu.matmul %9, %1, %cst_16 {dimension_numbers = #tpu.dot_dimension_numbers<[1], [0], [0], [1], [0, 0, 1, 1], [], []>} : vector<2x128xf32>, vector<128x512xf32>, vector<2x512xf32> -> vector<2x512xf32>
    %17 = arith.addf %15, %16 : vector<2x512xf32>
    %18 = arith.addf %17, %4 : vector<2x512xf32>
    %19 = math.tanh %18 : vector<2x512xf32>
    %20 = vector.extract_strided_slice %19 {offsets = [0, 0], sizes = [2, 128], strides = [1, 1]} : vector<2x512xf32> to vector<2x128xf32>
    %21 = vector.extract_strided_slice %19 {offsets = [0, 128], sizes = [2, 384], strides = [1, 1]} : vector<2x512xf32> to vector<2x384xf32>
    %cst_17 = arith.constant 5.000000e-01 : f32
    %22 = vector.broadcast %cst_17 : f32 to vector<2x384xf32>
    %23 = arith.mulf %22, %21 : vector<2x384xf32>
    %cst_18 = arith.constant 5.000000e-01 : f32
    %24 = vector.broadcast %cst_18 : f32 to vector<2x384xf32>
    %25 = arith.addf %23, %24 : vector<2x384xf32>
    %26 = vector.extract_strided_slice %25 {offsets = [0, 0], sizes = [2, 128], strides = [1, 1]} : vector<2x384xf32> to vector<2x128xf32>
    %27 = vector.extract_strided_slice %25 {offsets = [0, 128], sizes = [2, 128], strides = [1, 1]} : vector<2x384xf32> to vector<2x128xf32>
    %28 = vector.extract_strided_slice %25 {offsets = [0, 256], sizes = [2, 128], strides = [1, 1]} : vector<2x384xf32> to vector<2x128xf32>
    %29 = arith.mulf %10, %27 : vector<2x128xf32>
    %30 = arith.mulf %26, %20 : vector<2x128xf32>
    %31 = arith.addf %29, %30 : vector<2x128xf32>
    %32 = math.tanh %31 : vector<2x128xf32>
    %33 = arith.mulf %28, %32 : vector<2x128xf32>
    %cst_19 = arith.constant dense<0.000000e+00> : vector<2x128xf32>
    %34 = tpu.matmul %33, %5, %cst_19 {dimension_numbers = #tpu.dot_dimension_numbers<[1], [0], [0], [1], [0, 0, 1, 1], [], []>} : vector<2x128xf32>, vector<128x128xf32>, vector<2x128xf32> -> vector<2x128xf32>
    %35 = arith.addf %34, %8 : vector<2x128xf32>
    %36 = math.tanh %35 : vector<2x128xf32>
    %37 = math.exp %36 : vector<2x128xf32>
    %38 = arith.addf %11, %37 : vector<2x128xf32>
    %39 = arith.mulf %37, %33 : vector<2x128xf32>
    %40 = arith.addf %12, %39 : vector<2x128xf32>
    %c1 = arith.constant 1 : index
    %c0_20 = arith.constant 0 : index
    %c0_21 = arith.constant 0 : index
    %41 = vector.load %arg0[%c1, %c0_20, %c0_21] : memref<8x2x4xf32, #tpu.memory_space<vmem>>, vector<1x2x4xf32>
    %42 = vector.shape_cast %41 : vector<1x2x4xf32> to vector<2x4xf32>
    %cst_22 = arith.constant dense<0.000000e+00> : vector<2x512xf32>
    %43 = tpu.matmul %42, %0, %cst_22 {dimension_numbers = #tpu.dot_dimension_numbers<[1], [0], [0], [1], [0, 0, 1, 1], [], []>} : vector<2x4xf32>, vector<4x512xf32>, vector<2x512xf32> -> vector<2x512xf32>
    %cst_23 = arith.constant dense<0.000000e+00> : vector<2x512xf32>
    %44 = tpu.matmul %33, %1, %cst_23 {dimension_numbers = #tpu.dot_dimension_numbers<[1], [0], [0], [1], [0, 0, 1, 1], [], []>} : vector<2x128xf32>, vector<128x512xf32>, vector<2x512xf32> -> vector<2x512xf32>
    %45 = arith.addf %43, %44 : vector<2x512xf32>
    %46 = arith.addf %45, %4 : vector<2x512xf32>
    %47 = math.tanh %46 : vector<2x512xf32>
    %48 = vector.extract_strided_slice %47 {offsets = [0, 0], sizes = [2, 128], strides = [1, 1]} : vector<2x512xf32> to vector<2x128xf32>
    %49 = vector.extract_strided_slice %47 {offsets = [0, 128], sizes = [2, 384], strides = [1, 1]} : vector<2x512xf32> to vector<2x384xf32>
    %cst_24 = arith.constant 5.000000e-01 : f32
    %50 = vector.broadcast %cst_24 : f32 to vector<2x384xf32>
    %51 = arith.mulf %50, %49 : vector<2x384xf32>
    %cst_25 = arith.constant 5.000000e-01 : f32
    %52 = vector.broadcast %cst_25 : f32 to vector<2x384xf32>
    %53 = arith.addf %51, %52 : vector<2x384xf32>
    %54 = vector.extract_strided_slice %53 {offsets = [0, 0], sizes = [2, 128], strides = [1, 1]} : vector<2x384xf32> to vector<2x128xf32>
    %55 = vector.extract_strided_slice %53 {offsets = [0, 128], sizes = [2, 128], strides = [1, 1]} : vector<2x384xf32> to vector<2x128xf32>
    %56 = vector.extract_strided_slice %53 {offsets = [0, 256], sizes = [2, 128], strides = [1, 1]} : vector<2x384xf32> to vector<2x128xf32>
    %57 = arith.mulf %31, %55 : vector<2x128xf32>
    %58 = arith.mulf %54, %48 : vector<2x128xf32>
    %59 = arith.addf %57, %58 : vector<2x128xf32>
    %60 = math.tanh %59 : vector<2x128xf32>
    %61 = arith.mulf %56, %60 : vector<2x128xf32>
    %cst_26 = arith.constant dense<0.000000e+00> : vector<2x128xf32>
    %62 = tpu.matmul %61, %5, %cst_26 {dimension_numbers = #tpu.dot_dimension_numbers<[1], [0], [0], [1], [0, 0, 1, 1], [], []>} : vector<2x128xf32>, vector<128x128xf32>, vector<2x128xf32> -> vector<2x128xf32>
    %63 = arith.addf %62, %8 : vector<2x128xf32>
    %64 = math.tanh %63 : vector<2x128xf32>
    %65 = math.exp %64 : vector<2x128xf32>
    %66 = arith.addf %38, %65 : vector<2x128xf32>
    %67 = arith.mulf %65, %61 : vector<2x128xf32>
    %68 = arith.addf %40, %67 : vector<2x128xf32>
    %c2 = arith.constant 2 : index
    %c0_27 = arith.constant 0 : index
    %c0_28 = arith.constant 0 : index
    %69 = vector.load %arg0[%c2, %c0_27, %c0_28] : memref<8x2x4xf32, #tpu.memory_space<vmem>>, vector<1x2x4xf32>
    %70 = vector.shape_cast %69 : vector<1x2x4xf32> to vector<2x4xf32>
    %cst_29 = arith.constant dense<0.000000e+00> : vector<2x512xf32>
    %71 = tpu.matmul %70, %0, %cst_29 {dimension_numbers = #tpu.dot_dimension_numbers<[1], [0], [0], [1], [0, 0, 1, 1], [], []>} : vector<2x4xf32>, vector<4x512xf32>, vector<2x512xf32> -> vector<2x512xf32>
    %cst_30 = arith.constant dense<0.000000e+00> : vector<2x512xf32>
    %72 = tpu.matmul %61, %1, %cst_30 {dimension_numbers = #tpu.dot_dimension_numbers<[1], [0], [0], [1], [0, 0, 1, 1], [], []>} : vector<2x128xf32>, vector<128x512xf32>, vector<2x512xf32> -> vector<2x512xf32>
    %73 = arith.addf %71, %72 : vector<2x512xf32>
    %74 = arith.addf %73, %4 : vector<2x512xf32>
    %75 = math.tanh %74 : vector<2x512xf32>
    %76 = vector.extract_strided_slice %75 {offsets = [0, 0], sizes = [2, 128], strides = [1, 1]} : vector<2x512xf32> to vector<2x128xf32>
    %77 = vector.extract_strided_slice %75 {offsets = [0, 128], sizes = [2, 384], strides = [1, 1]} : vector<2x512xf32> to vector<2x384xf32>
    %cst_31 = arith.constant 5.000000e-01 : f32
    %78 = vector.broadcast %cst_31 : f32 to vector<2x384xf32>
    %79 = arith.mulf %78, %77 : vector<2x384xf32>
    %cst_32 = arith.constant 5.000000e-01 : f32
    %80 = vector.broadcast %cst_32 : f32 to vector<2x384xf32>
    %81 = arith.addf %79, %80 : vector<2x384xf32>
    %82 = vector.extract_strided_slice %81 {offsets = [0, 0], sizes = [2, 128], strides = [1, 1]} : vector<2x384xf32> to vector<2x128xf32>
    %83 = vector.extract_strided_slice %81 {offsets = [0, 128], sizes = [2, 128], strides = [1, 1]} : vector<2x384xf32> to vector<2x128xf32>
    %84 = vector.extract_strided_slice %81 {offsets = [0, 256], sizes = [2, 128], strides = [1, 1]} : vector<2x384xf32> to vector<2x128xf32>
    %85 = arith.mulf %59, %83 : vector<2x128xf32>
    %86 = arith.mulf %82, %76 : vector<2x128xf32>
    %87 = arith.addf %85, %86 : vector<2x128xf32>
    %88 = math.tanh %87 : vector<2x128xf32>
    %89 = arith.mulf %84, %88 : vector<2x128xf32>
    %cst_33 = arith.constant dense<0.000000e+00> : vector<2x128xf32>
    %90 = tpu.matmul %89, %5, %cst_33 {dimension_numbers = #tpu.dot_dimension_numbers<[1], [0], [0], [1], [0, 0, 1, 1], [], []>} : vector<2x128xf32>, vector<128x128xf32>, vector<2x128xf32> -> vector<2x128xf32>
    %91 = arith.addf %90, %8 : vector<2x128xf32>
    %92 = math.tanh %91 : vector<2x128xf32>
    %93 = math.exp %92 : vector<2x128xf32>
    %94 = arith.addf %66, %93 : vector<2x128xf32>
    %95 = arith.mulf %93, %89 : vector<2x128xf32>
    %96 = arith.addf %68, %95 : vector<2x128xf32>
    %c3 = arith.constant 3 : index
    %c0_34 = arith.constant 0 : index
    %c0_35 = arith.constant 0 : index
    %97 = vector.load %arg0[%c3, %c0_34, %c0_35] : memref<8x2x4xf32, #tpu.memory_space<vmem>>, vector<1x2x4xf32>
    %98 = vector.shape_cast %97 : vector<1x2x4xf32> to vector<2x4xf32>
    %cst_36 = arith.constant dense<0.000000e+00> : vector<2x512xf32>
    %99 = tpu.matmul %98, %0, %cst_36 {dimension_numbers = #tpu.dot_dimension_numbers<[1], [0], [0], [1], [0, 0, 1, 1], [], []>} : vector<2x4xf32>, vector<4x512xf32>, vector<2x512xf32> -> vector<2x512xf32>
    %cst_37 = arith.constant dense<0.000000e+00> : vector<2x512xf32>
    %100 = tpu.matmul %89, %1, %cst_37 {dimension_numbers = #tpu.dot_dimension_numbers<[1], [0], [0], [1], [0, 0, 1, 1], [], []>} : vector<2x128xf32>, vector<128x512xf32>, vector<2x512xf32> -> vector<2x512xf32>
    %101 = arith.addf %99, %100 : vector<2x512xf32>
    %102 = arith.addf %101, %4 : vector<2x512xf32>
    %103 = math.tanh %102 : vector<2x512xf32>
    %104 = vector.extract_strided_slice %103 {offsets = [0, 0], sizes = [2, 128], strides = [1, 1]} : vector<2x512xf32> to vector<2x128xf32>
    %105 = vector.extract_strided_slice %103 {offsets = [0, 128], sizes = [2, 384], strides = [1, 1]} : vector<2x512xf32> to vector<2x384xf32>
    %cst_38 = arith.constant 5.000000e-01 : f32
    %106 = vector.broadcast %cst_38 : f32 to vector<2x384xf32>
    %107 = arith.mulf %106, %105 : vector<2x384xf32>
    %cst_39 = arith.constant 5.000000e-01 : f32
    %108 = vector.broadcast %cst_39 : f32 to vector<2x384xf32>
    %109 = arith.addf %107, %108 : vector<2x384xf32>
    %110 = vector.extract_strided_slice %109 {offsets = [0, 0], sizes = [2, 128], strides = [1, 1]} : vector<2x384xf32> to vector<2x128xf32>
    %111 = vector.extract_strided_slice %109 {offsets = [0, 128], sizes = [2, 128], strides = [1, 1]} : vector<2x384xf32> to vector<2x128xf32>
    %112 = vector.extract_strided_slice %109 {offsets = [0, 256], sizes = [2, 128], strides = [1, 1]} : vector<2x384xf32> to vector<2x128xf32>
    %113 = arith.mulf %87, %111 : vector<2x128xf32>
    %114 = arith.mulf %110, %104 : vector<2x128xf32>
    %115 = arith.addf %113, %114 : vector<2x128xf32>
    %116 = math.tanh %115 : vector<2x128xf32>
    %117 = arith.mulf %112, %116 : vector<2x128xf32>
    %cst_40 = arith.constant dense<0.000000e+00> : vector<2x128xf32>
    %118 = tpu.matmul %117, %5, %cst_40 {dimension_numbers = #tpu.dot_dimension_numbers<[1], [0], [0], [1], [0, 0, 1, 1], [], []>} : vector<2x128xf32>, vector<128x128xf32>, vector<2x128xf32> -> vector<2x128xf32>
    %119 = arith.addf %118, %8 : vector<2x128xf32>
    %120 = math.tanh %119 : vector<2x128xf32>
    %121 = math.exp %120 : vector<2x128xf32>
    %122 = arith.addf %94, %121 : vector<2x128xf32>
    %123 = arith.mulf %121, %117 : vector<2x128xf32>
    %124 = arith.addf %96, %123 : vector<2x128xf32>
    %c4 = arith.constant 4 : index
    %c0_41 = arith.constant 0 : index
    %c0_42 = arith.constant 0 : index
    %125 = vector.load %arg0[%c4, %c0_41, %c0_42] : memref<8x2x4xf32, #tpu.memory_space<vmem>>, vector<1x2x4xf32>
    %126 = vector.shape_cast %125 : vector<1x2x4xf32> to vector<2x4xf32>
    %cst_43 = arith.constant dense<0.000000e+00> : vector<2x512xf32>
    %127 = tpu.matmul %126, %0, %cst_43 {dimension_numbers = #tpu.dot_dimension_numbers<[1], [0], [0], [1], [0, 0, 1, 1], [], []>} : vector<2x4xf32>, vector<4x512xf32>, vector<2x512xf32> -> vector<2x512xf32>
    %cst_44 = arith.constant dense<0.000000e+00> : vector<2x512xf32>
    %128 = tpu.matmul %117, %1, %cst_44 {dimension_numbers = #tpu.dot_dimension_numbers<[1], [0], [0], [1], [0, 0, 1, 1], [], []>} : vector<2x128xf32>, vector<128x512xf32>, vector<2x512xf32> -> vector<2x512xf32>
    %129 = arith.addf %127, %128 : vector<2x512xf32>
    %130 = arith.addf %129, %4 : vector<2x512xf32>
    %131 = math.tanh %130 : vector<2x512xf32>
    %132 = vector.extract_strided_slice %131 {offsets = [0, 0], sizes = [2, 128], strides = [1, 1]} : vector<2x512xf32> to vector<2x128xf32>
    %133 = vector.extract_strided_slice %131 {offsets = [0, 128], sizes = [2, 384], strides = [1, 1]} : vector<2x512xf32> to vector<2x384xf32>
    %cst_45 = arith.constant 5.000000e-01 : f32
    %134 = vector.broadcast %cst_45 : f32 to vector<2x384xf32>
    %135 = arith.mulf %134, %133 : vector<2x384xf32>
    %cst_46 = arith.constant 5.000000e-01 : f32
    %136 = vector.broadcast %cst_46 : f32 to vector<2x384xf32>
    %137 = arith.addf %135, %136 : vector<2x384xf32>
    %138 = vector.extract_strided_slice %137 {offsets = [0, 0], sizes = [2, 128], strides = [1, 1]} : vector<2x384xf32> to vector<2x128xf32>
    %139 = vector.extract_strided_slice %137 {offsets = [0, 128], sizes = [2, 128], strides = [1, 1]} : vector<2x384xf32> to vector<2x128xf32>
    %140 = vector.extract_strided_slice %137 {offsets = [0, 256], sizes = [2, 128], strides = [1, 1]} : vector<2x384xf32> to vector<2x128xf32>
    %141 = arith.mulf %115, %139 : vector<2x128xf32>
    %142 = arith.mulf %138, %132 : vector<2x128xf32>
    %143 = arith.addf %141, %142 : vector<2x128xf32>
    %144 = math.tanh %143 : vector<2x128xf32>
    %145 = arith.mulf %140, %144 : vector<2x128xf32>
    %cst_47 = arith.constant dense<0.000000e+00> : vector<2x128xf32>
    %146 = tpu.matmul %145, %5, %cst_47 {dimension_numbers = #tpu.dot_dimension_numbers<[1], [0], [0], [1], [0, 0, 1, 1], [], []>} : vector<2x128xf32>, vector<128x128xf32>, vector<2x128xf32> -> vector<2x128xf32>
    %147 = arith.addf %146, %8 : vector<2x128xf32>
    %148 = math.tanh %147 : vector<2x128xf32>
    %149 = math.exp %148 : vector<2x128xf32>
    %150 = arith.addf %122, %149 : vector<2x128xf32>
    %151 = arith.mulf %149, %145 : vector<2x128xf32>
    %152 = arith.addf %124, %151 : vector<2x128xf32>
    %c5 = arith.constant 5 : index
    %c0_48 = arith.constant 0 : index
    %c0_49 = arith.constant 0 : index
    %153 = vector.load %arg0[%c5, %c0_48, %c0_49] : memref<8x2x4xf32, #tpu.memory_space<vmem>>, vector<1x2x4xf32>
    %154 = vector.shape_cast %153 : vector<1x2x4xf32> to vector<2x4xf32>
    %cst_50 = arith.constant dense<0.000000e+00> : vector<2x512xf32>
    %155 = tpu.matmul %154, %0, %cst_50 {dimension_numbers = #tpu.dot_dimension_numbers<[1], [0], [0], [1], [0, 0, 1, 1], [], []>} : vector<2x4xf32>, vector<4x512xf32>, vector<2x512xf32> -> vector<2x512xf32>
    %cst_51 = arith.constant dense<0.000000e+00> : vector<2x512xf32>
    %156 = tpu.matmul %145, %1, %cst_51 {dimension_numbers = #tpu.dot_dimension_numbers<[1], [0], [0], [1], [0, 0, 1, 1], [], []>} : vector<2x128xf32>, vector<128x512xf32>, vector<2x512xf32> -> vector<2x512xf32>
    %157 = arith.addf %155, %156 : vector<2x512xf32>
    %158 = arith.addf %157, %4 : vector<2x512xf32>
    %159 = math.tanh %158 : vector<2x512xf32>
    %160 = vector.extract_strided_slice %159 {offsets = [0, 0], sizes = [2, 128], strides = [1, 1]} : vector<2x512xf32> to vector<2x128xf32>
    %161 = vector.extract_strided_slice %159 {offsets = [0, 128], sizes = [2, 384], strides = [1, 1]} : vector<2x512xf32> to vector<2x384xf32>
    %cst_52 = arith.constant 5.000000e-01 : f32
    %162 = vector.broadcast %cst_52 : f32 to vector<2x384xf32>
    %163 = arith.mulf %162, %161 : vector<2x384xf32>
    %cst_53 = arith.constant 5.000000e-01 : f32
    %164 = vector.broadcast %cst_53 : f32 to vector<2x384xf32>
    %165 = arith.addf %163, %164 : vector<2x384xf32>
    %166 = vector.extract_strided_slice %165 {offsets = [0, 0], sizes = [2, 128], strides = [1, 1]} : vector<2x384xf32> to vector<2x128xf32>
    %167 = vector.extract_strided_slice %165 {offsets = [0, 128], sizes = [2, 128], strides = [1, 1]} : vector<2x384xf32> to vector<2x128xf32>
    %168 = vector.extract_strided_slice %165 {offsets = [0, 256], sizes = [2, 128], strides = [1, 1]} : vector<2x384xf32> to vector<2x128xf32>
    %169 = arith.mulf %143, %167 : vector<2x128xf32>
    %170 = arith.mulf %166, %160 : vector<2x128xf32>
    %171 = arith.addf %169, %170 : vector<2x128xf32>
    %172 = math.tanh %171 : vector<2x128xf32>
    %173 = arith.mulf %168, %172 : vector<2x128xf32>
    %cst_54 = arith.constant dense<0.000000e+00> : vector<2x128xf32>
    %174 = tpu.matmul %173, %5, %cst_54 {dimension_numbers = #tpu.dot_dimension_numbers<[1], [0], [0], [1], [0, 0, 1, 1], [], []>} : vector<2x128xf32>, vector<128x128xf32>, vector<2x128xf32> -> vector<2x128xf32>
    %175 = arith.addf %174, %8 : vector<2x128xf32>
    %176 = math.tanh %175 : vector<2x128xf32>
    %177 = math.exp %176 : vector<2x128xf32>
    %178 = arith.addf %150, %177 : vector<2x128xf32>
    %179 = arith.mulf %177, %173 : vector<2x128xf32>
    %180 = arith.addf %152, %179 : vector<2x128xf32>
    %c6 = arith.constant 6 : index
    %c0_55 = arith.constant 0 : index
    %c0_56 = arith.constant 0 : index
    %181 = vector.load %arg0[%c6, %c0_55, %c0_56] : memref<8x2x4xf32, #tpu.memory_space<vmem>>, vector<1x2x4xf32>
    %182 = vector.shape_cast %181 : vector<1x2x4xf32> to vector<2x4xf32>
    %cst_57 = arith.constant dense<0.000000e+00> : vector<2x512xf32>
    %183 = tpu.matmul %182, %0, %cst_57 {dimension_numbers = #tpu.dot_dimension_numbers<[1], [0], [0], [1], [0, 0, 1, 1], [], []>} : vector<2x4xf32>, vector<4x512xf32>, vector<2x512xf32> -> vector<2x512xf32>
    %cst_58 = arith.constant dense<0.000000e+00> : vector<2x512xf32>
    %184 = tpu.matmul %173, %1, %cst_58 {dimension_numbers = #tpu.dot_dimension_numbers<[1], [0], [0], [1], [0, 0, 1, 1], [], []>} : vector<2x128xf32>, vector<128x512xf32>, vector<2x512xf32> -> vector<2x512xf32>
    %185 = arith.addf %183, %184 : vector<2x512xf32>
    %186 = arith.addf %185, %4 : vector<2x512xf32>
    %187 = math.tanh %186 : vector<2x512xf32>
    %188 = vector.extract_strided_slice %187 {offsets = [0, 0], sizes = [2, 128], strides = [1, 1]} : vector<2x512xf32> to vector<2x128xf32>
    %189 = vector.extract_strided_slice %187 {offsets = [0, 128], sizes = [2, 384], strides = [1, 1]} : vector<2x512xf32> to vector<2x384xf32>
    %cst_59 = arith.constant 5.000000e-01 : f32
    %190 = vector.broadcast %cst_59 : f32 to vector<2x384xf32>
    %191 = arith.mulf %190, %189 : vector<2x384xf32>
    %cst_60 = arith.constant 5.000000e-01 : f32
    %192 = vector.broadcast %cst_60 : f32 to vector<2x384xf32>
    %193 = arith.addf %191, %192 : vector<2x384xf32>
    %194 = vector.extract_strided_slice %193 {offsets = [0, 0], sizes = [2, 128], strides = [1, 1]} : vector<2x384xf32> to vector<2x128xf32>
    %195 = vector.extract_strided_slice %193 {offsets = [0, 128], sizes = [2, 128], strides = [1, 1]} : vector<2x384xf32> to vector<2x128xf32>
    %196 = vector.extract_strided_slice %193 {offsets = [0, 256], sizes = [2, 128], strides = [1, 1]} : vector<2x384xf32> to vector<2x128xf32>
    %197 = arith.mulf %171, %195 : vector<2x128xf32>
    %198 = arith.mulf %194, %188 : vector<2x128xf32>
    %199 = arith.addf %197, %198 : vector<2x128xf32>
    %200 = math.tanh %199 : vector<2x128xf32>
    %201 = arith.mulf %196, %200 : vector<2x128xf32>
    %cst_61 = arith.constant dense<0.000000e+00> : vector<2x128xf32>
    %202 = tpu.matmul %201, %5, %cst_61 {dimension_numbers = #tpu.dot_dimension_numbers<[1], [0], [0], [1], [0, 0, 1, 1], [], []>} : vector<2x128xf32>, vector<128x128xf32>, vector<2x128xf32> -> vector<2x128xf32>
    %203 = arith.addf %202, %8 : vector<2x128xf32>
    %204 = math.tanh %203 : vector<2x128xf32>
    %205 = math.exp %204 : vector<2x128xf32>
    %206 = arith.addf %178, %205 : vector<2x128xf32>
    %207 = arith.mulf %205, %201 : vector<2x128xf32>
    %208 = arith.addf %180, %207 : vector<2x128xf32>
    %c7 = arith.constant 7 : index
    %c0_62 = arith.constant 0 : index
    %c0_63 = arith.constant 0 : index
    %209 = vector.load %arg0[%c7, %c0_62, %c0_63] : memref<8x2x4xf32, #tpu.memory_space<vmem>>, vector<1x2x4xf32>
    %210 = vector.shape_cast %209 : vector<1x2x4xf32> to vector<2x4xf32>
    %cst_64 = arith.constant dense<0.000000e+00> : vector<2x512xf32>
    %211 = tpu.matmul %210, %0, %cst_64 {dimension_numbers = #tpu.dot_dimension_numbers<[1], [0], [0], [1], [0, 0, 1, 1], [], []>} : vector<2x4xf32>, vector<4x512xf32>, vector<2x512xf32> -> vector<2x512xf32>
    %cst_65 = arith.constant dense<0.000000e+00> : vector<2x512xf32>
    %212 = tpu.matmul %201, %1, %cst_65 {dimension_numbers = #tpu.dot_dimension_numbers<[1], [0], [0], [1], [0, 0, 1, 1], [], []>} : vector<2x128xf32>, vector<128x512xf32>, vector<2x512xf32> -> vector<2x512xf32>
    %213 = arith.addf %211, %212 : vector<2x512xf32>
    %214 = arith.addf %213, %4 : vector<2x512xf32>
    %215 = math.tanh %214 : vector<2x512xf32>
    %216 = vector.extract_strided_slice %215 {offsets = [0, 0], sizes = [2, 128], strides = [1, 1]} : vector<2x512xf32> to vector<2x128xf32>
    %217 = vector.extract_strided_slice %215 {offsets = [0, 128], sizes = [2, 384], strides = [1, 1]} : vector<2x512xf32> to vector<2x384xf32>
    %cst_66 = arith.constant 5.000000e-01 : f32
    %218 = vector.broadcast %cst_66 : f32 to vector<2x384xf32>
    %219 = arith.mulf %218, %217 : vector<2x384xf32>
    %cst_67 = arith.constant 5.000000e-01 : f32
    %220 = vector.broadcast %cst_67 : f32 to vector<2x384xf32>
    %221 = arith.addf %219, %220 : vector<2x384xf32>
    %222 = vector.extract_strided_slice %221 {offsets = [0, 0], sizes = [2, 128], strides = [1, 1]} : vector<2x384xf32> to vector<2x128xf32>
    %223 = vector.extract_strided_slice %221 {offsets = [0, 128], sizes = [2, 128], strides = [1, 1]} : vector<2x384xf32> to vector<2x128xf32>
    %224 = vector.extract_strided_slice %221 {offsets = [0, 256], sizes = [2, 128], strides = [1, 1]} : vector<2x384xf32> to vector<2x128xf32>
    %225 = arith.mulf %199, %223 : vector<2x128xf32>
    %226 = arith.mulf %222, %216 : vector<2x128xf32>
    %227 = arith.addf %225, %226 : vector<2x128xf32>
    %228 = math.tanh %227 : vector<2x128xf32>
    %229 = arith.mulf %224, %228 : vector<2x128xf32>
    %cst_68 = arith.constant dense<0.000000e+00> : vector<2x128xf32>
    %230 = tpu.matmul %229, %5, %cst_68 {dimension_numbers = #tpu.dot_dimension_numbers<[1], [0], [0], [1], [0, 0, 1, 1], [], []>} : vector<2x128xf32>, vector<128x128xf32>, vector<2x128xf32> -> vector<2x128xf32>
    %231 = arith.addf %230, %8 : vector<2x128xf32>
    %232 = math.tanh %231 : vector<2x128xf32>
    %233 = math.exp %232 : vector<2x128xf32>
    %234 = arith.addf %206, %233 : vector<2x128xf32>
    %235 = arith.mulf %233, %229 : vector<2x128xf32>
    %236 = arith.addf %208, %235 : vector<2x128xf32>
    %cst_69 = arith.constant 1.000000e+00 : f32
    %237 = vector.broadcast %cst_69 : f32 to vector<2x128xf32>
    %238 = arith.divf %237, %234 : vector<2x128xf32>
    %239 = arith.mulf %236, %238 : vector<2x128xf32>
    %240 = vector.shape_cast %37 : vector<2x128xf32> to vector<2x1x128xf32>
    %241 = vector.shape_cast %65 : vector<2x128xf32> to vector<2x1x128xf32>
    %242 = vector.shape_cast %93 : vector<2x128xf32> to vector<2x1x128xf32>
    %243 = vector.shape_cast %121 : vector<2x128xf32> to vector<2x1x128xf32>
    %244 = vector.shape_cast %149 : vector<2x128xf32> to vector<2x1x128xf32>
    %245 = vector.shape_cast %177 : vector<2x128xf32> to vector<2x1x128xf32>
    %246 = vector.shape_cast %205 : vector<2x128xf32> to vector<2x1x128xf32>
    %247 = vector.shape_cast %233 : vector<2x128xf32> to vector<2x1x128xf32>
    %248 = tpu.concatenate %240, %241, %242, %243, %244, %245, %246, %247 in 1 : vector<2x1x128xf32>, vector<2x1x128xf32>, vector<2x1x128xf32>, vector<2x1x128xf32>, vector<2x1x128xf32>, vector<2x1x128xf32>, vector<2x1x128xf32>, vector<2x1x128xf32> -> vector<2x8x128xf32>
    %249 = vector.shape_cast %238 : vector<2x128xf32> to vector<2x1x128xf32>
    %250 = vector.broadcast %249 : vector<2x1x128xf32> to vector<2x8x128xf32>
    %251 = arith.mulf %248, %250 : vector<2x8x128xf32>
    %c0_70 = arith.constant 0 : index
    %c0_71 = arith.constant 0 : index
    %c0_72 = arith.constant 0 : index
    %252 = vector.load %arg12[%c0_70, %c0_71, %c0_72] : memref<2x8x128xf32, #tpu.memory_space<vmem>>, vector<2x8x128xf32>
    tpu.vector_store %arg12[%c0_70, %c0_71, %c0_72], %251 {strides = array<i32>} : memref<2x8x128xf32, #tpu.memory_space<vmem>>, vector<2x8x128xf32>,
    %253 = tpu.concatenate %239, %229 in 1 : vector<2x128xf32>, vector<2x128xf32> -> vector<2x256xf32>
    %c0_73 = arith.constant 0 : index
    %c0_74 = arith.constant 0 : index
    %254 = vector.load %arg6[%c0_73, %c0_74] : memref<256x4xf32, #tpu.memory_space<vmem>>, vector<256x4xf32>
    %cst_75 = arith.constant dense<0.000000e+00> : vector<2x4xf32>
    %255 = tpu.matmul %253, %254, %cst_75 {dimension_numbers = #tpu.dot_dimension_numbers<[1], [0], [0], [1], [0, 0, 1, 1], [], []>} : vector<2x256xf32>, vector<256x4xf32>, vector<2x4xf32> -> vector<2x4xf32>
    %c0_76 = arith.constant 0 : index
    %c0_77 = arith.constant 0 : index
    %256 = vector.load %arg7[%c0_76, %c0_77] : memref<1x1xf32, #tpu.memory_space<vmem>>, vector<1x1xf32>
    %257 = vector.broadcast %256 : vector<1x1xf32> to vector<2x4xf32>
    %258 = arith.addf %255, %257 : vector<2x4xf32>
    %259 = math.tanh %258 : vector<2x4xf32>
    %260 = math.exp %259 : vector<2x4xf32>
    %cst_78 = arith.constant dense<0.000000e+00> : vector<2xf32>
    %261 = vector.multi_reduction <add>, %260, %cst_78 [1] : vector<2x4xf32> to vector<2xf32>
    %262 = vector.shape_cast %261 : vector<2xf32> to vector<2x1xf32>
    %263 = vector.broadcast %262 : vector<2x1xf32> to vector<2x4xf32>
    %264 = arith.divf %260, %263 : vector<2x4xf32>
    %c0_79 = arith.constant 0 : index
    %c0_80 = arith.constant 0 : index
    %265 = vector.load %arg13[%c0_79, %c0_80] : memref<2x4xf32, #tpu.memory_space<vmem>>, vector<2x4xf32>
    tpu.vector_store %arg13[%c0_79, %c0_80], %264 {strides = array<i32>} : memref<2x4xf32, #tpu.memory_space<vmem>>, vector<2x4xf32>,
    %c0_81 = arith.constant 0 : index
    %c0_82 = arith.constant 0 : index
    %266 = vector.load %arg10[%c0_81, %c0_82] : memref<4x256xf32, #tpu.memory_space<vmem>>, vector<4x256xf32>
    %cst_83 = arith.constant dense<0.000000e+00> : vector<2x256xf32>
    %267 = tpu.matmul %264, %266, %cst_83 {dimension_numbers = #tpu.dot_dimension_numbers<[1], [0], [0], [1], [0, 0, 1, 1], [], []>} : vector<2x4xf32>, vector<4x256xf32>, vector<2x256xf32> -> vector<2x256xf32>
    %268 = arith.mulf %267, %253 : vector<2x256xf32>
    %c0_84 = arith.constant 0 : index
    %c0_85 = arith.constant 0 : index
    %269 = vector.load %arg8[%c0_84, %c0_85] : memref<256x2xf32, #tpu.memory_space<vmem>>, vector<256x2xf32>
    %cst_86 = arith.constant dense<0.000000e+00> : vector<2x2xf32>
    %270 = tpu.matmul %268, %269, %cst_86 {dimension_numbers = #tpu.dot_dimension_numbers<[1], [0], [0], [1], [0, 0, 1, 1], [], []>} : vector<2x256xf32>, vector<256x2xf32>, vector<2x2xf32> -> vector<2x2xf32>
    %c0_87 = arith.constant 0 : index
    %c0_88 = arith.constant 0 : index
    %271 = vector.load %arg9[%c0_87, %c0_88] : memref<1x2xf32, #tpu.memory_space<vmem>>, vector<1x2xf32>
    %272 = vector.broadcast %271 : vector<1x2xf32> to vector<2x2xf32>
    %273 = arith.addf %270, %272 : vector<2x2xf32>
    %c0_89 = arith.constant 0 : index
    %c0_90 = arith.constant 0 : index
    %274 = vector.load %arg11[%c0_89, %c0_90] : memref<2x2xf32, #tpu.memory_space<vmem>>, vector<2x2xf32>
    tpu.vector_store %arg11[%c0_89, %c0_90], %273 {strides = array<i32>} : memref<2x2xf32, #tpu.memory_space<vmem>>, vector<2x2xf32>,
    return
  }
}

</mosaic_0001>

<bundles_post_ra>
// kernel: causal_ml_forward.1
= control target key start
LH: loop header
LB: loop body
LE: loop exit
PB: predicated region body
PF: predicated region fallthrough
CT: control target
= control target key end

     0   :  { %s6916_s0 = inlined_call_operand.vmem [shape: f32[8,2,4], index: 0, kind: input, shape index: {}]   ;;  %s6917_s1 = inlined_call_operand.vmem [shape: f32[4,512], index: 1, kind: input, shape index: {}]   ;;  %s6918_s2 = inlined_call_operand.vmem [shape: f32[128,512], index: 2, kind: input, shape index: {}]   ;;  %s6919_s3 = inlined_call_operand.vmem [shape: f32[1,512], index: 3, kind: input, shape index: {}]   ;;  %s6920_s4 = inlined_call_operand.hbm [shape: f32[128,128], index: 4, kind: input, shape index: {}]   ;;  %s6921_s5 = inlined_call_operand.vmem [shape: f32[1,128], index: 5, kind: input, shape index: {}]   ;;  %s6922_s6 = inlined_call_operand.vmem [shape: f32[256,4], index: 6, kind: input, shape index: {}]   ;;  %s6923_s7 = inlined_call_operand.<no memory space> [shape: f32[1,1], index: 7, kind: input, shape index: {}]   ;;  %s6924_s8 = inlined_call_operand.vmem [shape: f32[256,2], index: 8, kind: input, shape index: {}]   ;;  %s6925_s9 = inlined_call_operand.vmem [shape: f32[1,2], index: 9, kind: input, shape index: {}]   ;;  %s6926_s10 = inlined_call_operand.vmem [shape: f32[4,256], index: 10, kind: input, shape index: {}]   ;;  %s6927_s11 = inlined_call_operand.hbm [shape: f32[2,2], index: 11, kind: output, shape index: {0}]   ;;  %s6928_s12 = inlined_call_operand.vmem [shape: f32[2,8,128], index: 12, kind: output, shape index: {1}]   ;;  %s6929_s13 = inlined_call_operand.hbm [shape: f32[2,4], index: 13, kind: output, shape index: {2}]  }
   0x1   :  { %v19_v0 = vstv %s6923_s7 }
   0x2   :  { %20 = vst [vmem:[#allocation2] sm:$0x1] %v19_v0 }
   0x3   :  { %21 = vsyncpa [#allocation4], 0 }
   0x4   :  { %22 = vsyncpa [#allocation5], 0 }
   0x5   :  { %23 = vsyncpa [#allocation8], 0  ;;  %s5476_s27 = smov [#allocation3]   ;;  %s5404_s14 = scalar_lea.hbm %s6920_s4, 2048 }
   0x6   :  { %s37_s28 = sshll.u32 %s5476_s27, 4  ;;  %p5405_p0 = scmp.ne.s32.totalorder %s6920_s4, %s5404_s14  ;;  %s38_s28 = int_to_ptr.vmem [resolvable:$true] %s37_s28 }
   0x7   :  { %p5408_p1 = scmp.lt.u32.totalorder %s5404_s14, %s6920_s4 }
   0x9   :  { %p5410_p2 = pnand %p5408_p1, %p5405_p0 }
   0xb   :  { %5413 = shalt.err (!%p5410_p2)
}
   0xc   :  { %s5414_s7 = scalar_lea.vmem %s38_s28, 2048  ;;  %p5419_p4 = scmp.lt.s32.totalorder %s38_s28, %s38_s28 }
   0xd   :  { %p5415_p3 = scmp.ne.s32.totalorder %s38_s28, %s5414_s7  ;;  %p5420_p5 = scmp.lt.s32.totalorder %s5414_s7, %s5414_s7 }
   0xf   :  { %p5421_p6 = por %p5420_p5, %p5419_p4 }
  0x11   :  { %p5422_p7 = pnand %p5421_p6, %p5415_p3 }
  0x13   :  { %5425 = shalt.err (!%p5422_p7)
}
  0x14   :  { %s5477_s19 = smov 128   ;;  %s5478_s20 = smov 8  }
  0x15   :  { %43 = dma.hbm_to_vmem [thread:$0]  %s6920_s4, 2048, %s38_s28, [#allocation4], %s5477_s19, %s5477_s19, %s5478_s20  }
  0x16   :  { %5470 = dma.done.wait [#allocation4], 2048  }
  0x17   :  { %5471 = vsyncadd [#allocation4], 4294965248  ;;  %v6932_v1 = vmov 0.0   ;;  %v62_v2 = vld [vmem:[%s6918_s2 + $0x8] sm:$0xff]  ;;  %v64_v4 = vld [vmem:[%s6918_s2 + $0x18] sm:$0xff]  ;;  %vm321_vm0 = vcmask 1043456  }
  0x18   :  { %235 = vmatprep.mubr.f32.mxu0 %v6932_v1  ;;  %306 = vmatprep.mubr.f32.mxu1 %v6932_v1  ;;  %v66_v3 = vld [vmem:[%s6918_s2 + $0x28] sm:$0xff]  ;;  %v68_v6 = vld [vmem:[%s6918_s2 + $0x38] sm:$0xff]  ;;  %v61_v7 = vld [vmem:[%s6918_s2] sm:$0xff]  ;;  %vm317_vm1 = vcmask 31744   ;;  %vm5481_vm2 = vmmov 0   ;;  %vm3514_vm3 = vcmask 1040384  }
  0x19   :  { %v5582_v5 = vpack.c.bf16 %v66_v3, %v62_v2  ;;  %v65_v8 = vld [vmem:[%s6918_s2 + $0x20] sm:$0xff]  ;;  %v5593_v9 = vpack.c.bf16 %v68_v6, %v64_v4  ;;  %v63_v11 = vld [vmem:[%s6918_s2 + $0x10] sm:$0xff]  ;;  %v70_v13 = vld [vmem:[%s6918_s2 + $0x48] sm:$0xff]  ;;  %vm3517_vm4 = vcmask 1041408   ;;  %vm3520_vm5 = vcmask 1042432   ;;  %s5484_s27 = smov [#allocation7]  }
  0x1a   :  { %v5595_v10 = vpack.c.bf16 %v65_v8, %v61_v7  ;;  %v67_v12 = vld [vmem:[%s6918_s2 + $0x30] sm:$0xff]  ;;  %v74_v15 = vld [vmem:[%s6918_s2 + $0x68] sm:$0xff]  ;;  %v72_v16 = vld [vmem:[%s6918_s2 + $0x58] sm:$0xff]  ;;  %vm3525_vm6 = vcmask 1044480   ;;  %vm3528_vm7 = vcmask 1045504   ;;  %vm3531_vm8 = vcmask 1046528  }
  0x1b   :  { %4468 = vmatprep.subr.bf16.mxu0 %v5582_v5  ;;  %v5607_v14 = vpack.c.bf16 %v67_v12, %v63_v11  ;;  %v76_v17 = vld [vmem:[%s6918_s2 + $0x78] sm:$0xff]  ;;  %4500 = vmatprep.subr.bf16.mxu1 %v5593_v9  ;;  %v5620_v18 = vpack.c.bf16 %v74_v15, %v70_v13  ;;  %v69_v20 = vld [vmem:[%s6918_s2 + $0x40] sm:$0xff]  ;;  %v71_v22 = vld [vmem:[%s6918_s2 + $0x50] sm:$0xff]  ;;  %vm3686_vm9 = vcmask 25600   ;;  %s3905_s29 = sshll.u32 %s5484_s27, 4  ;;  %s3906_s29 = int_to_ptr.vmem [resolvable:$true] %s3905_s29 }
  0x1c   :  { %4470 = vmatpush1.bf16.msra.mxu0 %v5595_v10  ;;  %v5622_v19 = vpack.c.bf16 %v76_v17, %v72_v16  ;;  %v73_v21 = vld [vmem:[%s6918_s2 + $0x60] sm:$0xff]  ;;  %v75_v24 = vld [vmem:[%s6918_s2 + $0x70] sm:$0xff]  ;;  %v78_v25 = vld [vmem:[%s6918_s2 + $0x88] sm:$0xff]  ;;  %s5426_s4 = scalar_lea.vmem %s3906_s29, 32  ;;  %p5431_p9 = scmp.lt.s32.totalorder %s3906_s29, %s3906_s29 }
  0x1d   :  { %4502 = vmatpush1.bf16.msra.mxu1 %v5607_v14  ;;  %v5634_v23 = vpack.c.bf16 %v73_v21, %v69_v20  ;;  %v82_v26 = vld [vmem:[%s6918_s2 + $0xa8] sm:$0xff]  ;;  %4472 = vmatprep.subr.bf16.mxu0 %v5620_v18  ;;  %v5647_v27 = vpack.c.bf16 %v75_v24, %v71_v22  ;;  %v80_v29 = vld [vmem:[%s6918_s2 + $0x98] sm:$0xff]  ;;  %v77_v31 = vld [vmem:[%s6918_s2 + $0x80] sm:$0xff]  ;;  %p5427_p8 = scmp.ne.s32.totalorder %s3906_s29, %s5426_s4  ;;  %p5432_p10 = scmp.lt.s32.totalorder %s5426_s4, %s5426_s4 }
  0x1e   :  { %4504 = vmatprep.subr.bf16.mxu1 %v5622_v19  ;;  %v5649_v28 = vpack.c.bf16 %v82_v26, %v78_v25  ;;  %v84_v30 = vld [vmem:[%s6918_s2 + $0xb8] sm:$0xff]  ;;  %v81_v33 = vld [vmem:[%s6918_s2 + $0xa0] sm:$0xff]  ;;  %v79_v34 = vld [vmem:[%s6918_s2 + $0x90] sm:$0xff] }
  0x1f   :  { %v5660_v32 = vpack.c.bf16 %v84_v30, %v80_v29  ;;  %v83_v35 = vld [vmem:[%s6918_s2 + $0xb0] sm:$0xff]  ;;  %v5672_v36 = vpack.c.bf16 %v81_v33, %v77_v31  ;;  %v86_v37 = vld [vmem:[%s6918_s2 + $0xc8] sm:$0xff]  ;;  %v88_v39 = vld [vmem:[%s6918_s2 + $0xd8] sm:$0xff]  ;;  %p5433_p11 = por %p5432_p10, %p5431_p9 }
  0x20   :  { %4474 = vmatpush1.bf16.msra.mxu0 %v5634_v23  ;;  %v90_v38 = vld [vmem:[%s6918_s2 + $0xe8] sm:$0xff]  ;;  %v5685_v40 = vpack.c.bf16 %v83_v35, %v79_v34  ;;  %v92_v42 = vld [vmem:[%s6918_s2 + $0xf8] sm:$0xff]  ;;  %v85_v43 = vld [vmem:[%s6918_s2 + $0xc0] sm:$0xff] }
  0x21   :  { %4506 = vmatpush1.bf16.msra.mxu1 %v5647_v27  ;;  %4476 = vmatprep.subr.bf16.mxu0 %v5649_v28  ;;  %v5687_v41 = vpack.c.bf16 %v90_v38, %v86_v37  ;;  %v89_v44 = vld [vmem:[%s6918_s2 + $0xe0] sm:$0xff]  ;;  %v5699_v45 = vpack.c.bf16 %v92_v42, %v88_v39  ;;  %v87_v46 = vld [vmem:[%s6918_s2 + $0xd0] sm:$0xff]  ;;  %v94_v48 = vld [vmem:[%s6918_s2 + $0x108] sm:$0xff]  ;;  %p5434_p12 = pnand %p5433_p11, %p5427_p8 }
  0x22   :  { %4508 = vmatprep.subr.bf16.mxu1 %v5660_v32  ;;  %v91_v47 = vld [vmem:[%s6918_s2 + $0xf0] sm:$0xff]  ;;  %v98_v49 = vld [vmem:[%s6918_s2 + $0x128] sm:$0xff]  ;;  %v96_v50 = vld [vmem:[%s6918_s2 + $0x118] sm:$0xff]  ;;  %v5720_v52 = vpack.c.bf16 %v89_v44, %v85_v43 }
  0x23   :  { %v100_v51 = vld [vmem:[%s6918_s2 + $0x138] sm:$0xff]  ;;  %v5724_v53 = vpack.c.bf16 %v91_v47, %v87_v46  ;;  %v5726_v54 = vpack.c.bf16 %v98_v49, %v94_v48  ;;  %v93_v55 = vld [vmem:[%s6918_s2 + $0x100] sm:$0xff]  ;;  %v95_v57 = vld [vmem:[%s6918_s2 + $0x110] sm:$0xff] }
  0x24   :  { %4478 = vmatpush1.bf16.msra.mxu0 %v5672_v36  ;;  %v97_v56 = vld [vmem:[%s6918_s2 + $0x120] sm:$0xff]  ;;  %v5738_v58 = vpack.c.bf16 %v100_v51, %v96_v50  ;;  %v99_v59 = vld [vmem:[%s6918_s2 + $0x130] sm:$0xff]  ;;  %v102_v60 = vld [vmem:[%s6918_s2 + $0x148] sm:$0xff] }
  0x25   :  { %4510 = vmatpush1.bf16.msra.mxu1 %v5685_v40  ;;  %4480 = vmatprep.subr.bf16.mxu0 %v5687_v41  ;;  %6965 = vst [vmem:[#allocation12_spill] sm:$0xff] %v5726_v54  ;;  %v106_v61 = vld [vmem:[%s6918_s2 + $0x168] sm:$0xff]  ;;  %v104_v62 = vld [vmem:[%s6918_s2 + $0x158] sm:$0xff]  ;;  %v5756_v0 = vpack.c.bf16 %v97_v56, %v93_v55  ;;  %v5760_v2 = vpack.c.bf16 %v99_v59, %v95_v57  ;;  %v101_v4 = vld [vmem:[%s6918_s2 + $0x140] sm:$0xff] }
  0x26   :  { %4512 = vmatprep.subr.bf16.mxu1 %v5699_v45  ;;  %v108_v63 = vld [vmem:[%s6918_s2 + $0x178] sm:$0xff]  ;;  %v5762_v3 = vpack.c.bf16 %v106_v61, %v102_v60  ;;  %v105_v6 = vld [vmem:[%s6918_s2 + $0x160] sm:$0xff]  ;;  %v103_v7 = vld [vmem:[%s6918_s2 + $0x150] sm:$0xff]  ;;  %v6930_v61 = vmov 0.0|0.0  }
  0x27   :  { %6966 = vst [vmem:[#allocation13_spill] sm:$0xff] %v5756_v0  ;;  %v5774_v8 = vpack.c.bf16 %v108_v63, %v104_v62  ;;  %v107_v11 = vld [vmem:[%s6918_s2 + $0x170] sm:$0xff]  ;;  %v110_v12 = vld [vmem:[%s6918_s2 + $0x188] sm:$0xff]  ;;  %v112_v15 = vld [vmem:[%s6918_s2 + $0x198] sm:$0xff]  ;;  %v5792_v17 = vpack.c.bf16 %v105_v6, %v101_v4 }
  0x28   :  { %4482 = vmatpush1.bf16.msra.mxu0 %v5720_v52  ;;  %6967 = vst [vmem:[#allocation14_spill] sm:$0xff] %v5762_v3  ;;  %v114_v13 = vld [vmem:[%s6918_s2 + $0x1a8] sm:$0xff]  ;;  %v116_v16 = vld [vmem:[%s6918_s2 + $0x1b8] sm:$0xff]  ;;  %v5796_v20 = vpack.c.bf16 %v107_v11, %v103_v7  ;;  %v109_v22 = vld [vmem:[%s6918_s2 + $0x180] sm:$0xff] }
  0x29   :  { %4514 = vmatpush1.bf16.msra.mxu1 %v5724_v53  ;;  %4484 = vmatprep.subr.bf16.mxu0 %v5726_v54  ;;  %6968 = vst [vmem:[#allocation15_spill] sm:$0xff] %v5792_v17  ;;  %v5798_v21 = vpack.c.bf16 %v114_v13, %v110_v12  ;;  %v113_v24 = vld [vmem:[%s6918_s2 + $0x1a0] sm:$0xff]  ;;  %v111_v25 = vld [vmem:[%s6918_s2 + $0x190] sm:$0xff]  ;;  %v5810_v26 = vpack.c.bf16 %v116_v16, %v112_v15  ;;  %v118_v30 = vld [vmem:[%s6918_s2 + $0x1c8] sm:$0xff] }
  0x2a   :  { %4516 = vmatprep.subr.bf16.mxu1 %v5738_v58  ;;  %v115_v29 = vld [vmem:[%s6918_s2 + $0x1b0] sm:$0xff]  ;;  %v122_v31 = vld [vmem:[%s6918_s2 + $0x1e8] sm:$0xff]  ;;  %v120_v33 = vld [vmem:[%s6918_s2 + $0x1d8] sm:$0xff]  ;;  %v5828_v35 = vpack.c.bf16 %v113_v24, %v109_v22 }
  0x2b   :  { %6969 = vst [vmem:[#allocation16_spill] sm:$0xff] %v5798_v21  ;;  %v124_v34 = vld [vmem:[%s6918_s2 + $0x1f8] sm:$0xff]  ;;  %v5832_v37 = vpack.c.bf16 %v115_v29, %v111_v25  ;;  %v5834_v38 = vpack.c.bf16 %v122_v31, %v118_v30  ;;  %v117_v39 = vld [vmem:[%s6918_s2 + $0x1c0] sm:$0xff]  ;;  %v119_v44 = vld [vmem:[%s6918_s2 + $0x1d0] sm:$0xff] }
  0x2c   :  { %4486 = vmatpush1.bf16.msra.mxu0 %v5756_v0  ;;  %6970 = vst [vmem:[#allocation17_spill] sm:$0xff] %v5828_v35  ;;  %v121_v42 = vld [vmem:[%s6918_s2 + $0x1e0] sm:$0xff]  ;;  %v5843_v43 = vpack.c.bf16 %v124_v34, %v120_v33  ;;  %v123_v46 = vld [vmem:[%s6918_s2 + $0x1f0] sm:$0xff]  ;;  %v5859_v48 = vld [vmem:[%s6917_s1 + $0x8] sm:$0xff] }
  0x2d   :  { %4518 = vmatpush1.bf16.msra.mxu1 %v5760_v2  ;;  %4488 = vmatprep.subr.bf16.mxu0 %v5762_v3  ;;  %6971 = vst [vmem:[#allocation18_spill] sm:$0xff] %v5834_v38  ;;  %v5854_v47 = vld [vmem:[%s6917_s1] sm:$0xff]  ;;  %v5862_v49 = vpack.c.bf16 %v121_v42, %v117_v39  ;;  %v5866_v50 = vpack.c.bf16 %v123_v46, %v119_v44  ;;  %v148_v59 = vld [vmem:[#allocation3 + $0x8] sm:$0xff]  ;;  %v149_v62 = vld [vmem:[#allocation3 + $0x10] sm:$0xff]  ;;  %v127_v46 = vlaneseq }
  0x2e   :  { %4520 = vmatprep.subr.bf16.mxu1 %v5774_v8  ;;  %v5870_v51 = vcombine.high %v5854_v47, %v5854_v47  ;;  %v5875_v55 = vcombine.high %v5859_v48, %v5859_v48  ;;  %v170_v56 = vld [vmem:[%s6916_s0] sm:$0x3]  ;;  %v152_v7 = vld [vmem:[#allocation3 + $0x28] sm:$0xff]  ;;  %v153_v12 = vld [vmem:[#allocation3 + $0x30] sm:$0xff] }
  0x2f   :  { %6972 = vst [vmem:[#allocation19_spill] sm:$0xff] %v5862_v49  ;;  %v147_v57 = vld [vmem:[#allocation3] sm:$0xff]  ;;  %v150_v63 = vld [vmem:[#allocation3 + $0x18] sm:$0xff]  ;;  %v156_v22 = vld [vmem:[#allocation3 + $0x48] sm:$0xff] }
  0x30   :  { %4490 = vmatpush1.bf16.msra.mxu0 %v5792_v17  ;;  %6973 = vst [vmem:[#allocation20_spill] sm:$0xff] %v5870_v51  ;;  %v5915_v60 = vpack.c.bf16 %v148_v59, %v147_v57  ;;  %v5920_v4 = vpack.c.bf16 %v150_v63, %v149_v62  ;;  %v151_v6 = vld [vmem:[#allocation3 + $0x20] sm:$0xff]  ;;  %v154_v13 = vld [vmem:[#allocation3 + $0x38] sm:$0xff]  ;;  %v157_v25 = vld [vmem:[#allocation3 + $0x50] sm:$0xff] }
  0x31   :  { %4522 = vmatpush1.bf16.msra.mxu1 %v5796_v20  ;;  %4492 = vmatprep.subr.bf16.mxu0 %v5798_v21  ;;  %v5924_v11 = vpack.c.bf16 %v152_v7, %v151_v6  ;;  %v5928_v15 = vpack.c.bf16 %v154_v13, %v153_v12  ;;  %v155_v16 = vld [vmem:[#allocation3 + $0x40] sm:$0xff]  ;;  %v158_v29 = vld [vmem:[#allocation3 + $0x58] sm:$0xff]  ;;  %v160_v33 = vld [vmem:[#allocation3 + $0x68] sm:$0xff] }
  0x32   :  { %4524 = vmatprep.subr.bf16.mxu1 %v5810_v26  ;;  %v5932_v24 = vpack.c.bf16 %v156_v22, %v155_v16  ;;  %v5936_v30 = vpack.c.bf16 %v158_v29, %v157_v25  ;;  %v159_v31 = vld [vmem:[#allocation3 + $0x60] sm:$0xff]  ;;  %v161_v39 = vld [vmem:[#allocation3 + $0x70] sm:$0xff]  ;;  %v162_v42 = vld [vmem:[#allocation3 + $0x78] sm:$0xff] }
  0x33   :  { %v5940_v34 = vpack.c.bf16 %v160_v33, %v159_v31  ;;  %v5944_v44 = vpack.c.bf16 %v162_v42, %v161_v39  ;;  %v125_v62 = vld [vmem:[%s6919_s3] sm:$0xf] }
  0x34   :  { %4494 = vmatpush1.bf16.msra.mxu0 %v5828_v35 }
  0x35   :  { %4526 = vmatpush1.bf16.msra.mxu1 %v5832_v37  ;;  %4496 = vmatprep.subr.bf16.mxu0 %v5834_v38 }
  0x36   :  { %4528 = vmatprep.subr.bf16.mxu1 %v5843_v43 }
  0x38   :  { %4498 = vmatpush1.bf16.msra.mxu0 %v5862_v49 }
  0x39   :  { %4530 = vmatpush1.bf16.msra.mxu1 %v5866_v50  ;;  %3921 = vmatprep.subr.msk.mxu0 %vm321_vm0, %v5870_v51 }
  0x3a   :  { %3924 = vmatprep.subr.msk.mxu1 %vm321_vm0, %v5875_v55 }
  0x3b   :  { %236 = vmatmul.mubr.f32.vlgmr.msra.gmra.mrb[0].mxu0 %v6932_v1 }
  0x3c   :  { %307 = vmatmul.mubr.f32.vlgmr.msra.gmra.mrb[0].mxu1 %v6932_v1  ;;  %3922 = vmatpush1.msk.msra.mxu0 %vm321_vm0, %v5854_v47 }
  0x3d   :  { %3925 = vmatpush1.msk.msra.mxu1 %vm321_vm0, %v5859_v48  ;;  %394 = vmatprep.mubr.f32.mxu0 %v6932_v1 }
  0x3e   :  { %465 = vmatprep.mubr.f32.mxu1 %v6932_v1  ;;  %4556 = vmatprep.subr.bf16.mxu1 %v5582_v5 }
  0x3f   :  { %4531 = vmatprep.subr.bf16.mxu0 %v6930_v61 }
  0x43   :  { %3923 = vmatmul.mubr.msk.f32.vlgmr.msra.gmra.mrb[0].mxu0 %vm317_vm1, %v170_v56 }
  0x44   :  { %3926 = vmatmul.mubr.msk.f32.vlgmr.msra.gmra.mrb[0].mxu1 %vm317_vm1, %v170_v56  ;;  %4533 = vmatpush3.bf16.msra.mxu0 %v5915_v60  ;;  %v5950_v56 = vshrl.u32 %v127_v46, 7 }
  0x45   :  { %4558 = vmatpush1.bf16.msra.mxu1 %v5595_v10  ;;  %633 = vmatprep.mubr.f32.mxu1 %v6932_v1 }
  0x46   :  { %4560 = vmatprep.subr.bf16.mxu1 %v5620_v18  ;;  %4534 = vmatprep.subr.bf16.mxu0 %v6930_v61  ;;  %6974 = vst [vmem:[#allocation21_spill] sm:$0xff] %v5950_v56  ;;  %v137_v57 = vsub.s32 2, %v5950_v56  ;;  %v133_v59 = vsub.s32 1, %v5950_v56  ;;  %v5958_v63 = vsub.s32 0, %v5950_v56  ;;  %v141_v33 = vsub.s32 3, %v5950_v56 }
  0x47   :  { %4219 = vmatprep.mubr.msk.f32.mxu0 %vm5481_vm2, %v6932_v1 }
  0x48   :  { %4536 = vmatpush3.bf16.msra.mxu0 %v5920_v4  ;;  %6975 = vst [vmem:[#allocation22_spill] sm:$0xff] %v5958_v63  ;;  %v5960_v6 = vrot.slane %v125_v62, %v137_v57  ;;  %v5962_v7 = vrot.slane %v125_v62, %v133_v59  ;;  %v5965_v13 = vrot.slane %v125_v62, %v5958_v63 }
  0x49   :  { %4562 = vmatpush1.bf16.msra.mxu1 %v5634_v23  ;;  %4537 = vmatprep.subr.bf16.mxu0 %v6930_v61  ;;  %v5971_v42 = vrot.slane %v125_v62, %v141_v33 }
  0x4a   :  { %4564 = vmatprep.subr.bf16.mxu1 %v5649_v28  ;;  %6976 = vst [vmem:[#allocation23_spill] sm:$0xff] %v5960_v6  ;;  %6977 = vst [vmem:[#allocation24_spill] sm:$0xff] %v5962_v7 }
  0x4b   :  { %6978 = vst [vmem:[#allocation25_spill] sm:$0xff] %v5965_v13 }
  0x4c   :  { %4539 = vmatpush3.bf16.msra.mxu0 %v5924_v11 }
  0x4d   :  { %4566 = vmatpush1.bf16.msra.mxu1 %v5672_v36  ;;  %4540 = vmatprep.subr.bf16.mxu0 %v6930_v61 }
  0x4e   :  { %4568 = vmatprep.subr.bf16.mxu1 %v5687_v41 }
  0x50   :  { %4542 = vmatpush3.bf16.msra.mxu0 %v5928_v15 }
  0x51   :  { %4570 = vmatpush1.bf16.msra.mxu1 %v5720_v52  ;;  %4543 = vmatprep.subr.bf16.mxu0 %v6930_v61 }
  0x52   :  { %4572 = vmatprep.subr.bf16.mxu1 %v5726_v54 }
  0x54   :  { %4545 = vmatpush3.bf16.msra.mxu0 %v5932_v24 }
  0x55   :  { %4574 = vmatpush1.bf16.msra.mxu1 %v5756_v0  ;;  %4546 = vmatprep.subr.bf16.mxu0 %v6930_v61 }
  0x56   :  { %4576 = vmatprep.subr.bf16.mxu1 %v5762_v3 }
  0x58   :  { %4548 = vmatpush3.bf16.msra.mxu0 %v5936_v30 }
  0x59   :  { %4578 = vmatpush1.bf16.msra.mxu1 %v5792_v17  ;;  %4549 = vmatprep.subr.bf16.mxu0 %v6930_v61 }
  0x5a   :  { %4580 = vmatprep.subr.bf16.mxu1 %v5798_v21 }
  0x5c   :  { %4551 = vmatpush3.bf16.msra.mxu0 %v5940_v34 }
  0x5d   :  { %4582 = vmatpush1.bf16.msra.mxu1 %v5828_v35  ;;  %4552 = vmatprep.subr.bf16.mxu0 %v6930_v61 }
  0x5e   :  { %4584 = vmatprep.subr.bf16.mxu1 %v5834_v38 }
  0x60   :  { %4554 = vmatpush3.bf16.msra.mxu0 %v5944_v44 }
  0x61   :  { %4586 = vmatpush1.bf16.msra.mxu1 %v5862_v49  ;;  %4588 = vmatprep.subr.bf16.mxu0 %v5593_v9 }
  0x62   :  { %3928 = vmatprep.subr.msk.mxu1 %vm321_vm0, %v5870_v51 }
 0x116   :  { %v396_v12 = vpop.f32.mrb[0].mxu0 }
 0x117   :  { %v467_v16 = vpop.f32.mrb[0].mxu1  ;;  %v398_v22 = vpop.f32.mrb[1].mxu0  ;;  %v472_v39 = vadd.f32 %v396_v12, %v5965_v13 }
 0x118   :  { %v474_v25 = vadd.f32 %v467_v16, %v5960_v6  ;;  %v473_v29 = vadd.f32 %v398_v22, %v5962_v7  ;;  %v469_v31 = vpop.f32.mrb[1].mxu1 }
 0x119   :  { %v475_v46 = vadd.f32 %v469_v31, %v5971_v42 }
 0x11a   :  { %5281 = vtanh.f32 %v474_v25 }
 0x11b   :  { %5283 = vtanh.f32 %v473_v29 }
 0x11c   :  { %5285 = vtanh.f32 %v472_v39 }
 0x11d   :  { %5287 = vtanh.f32 %v475_v46 }
 0x124   :  { %v5282_v57 = vpop.eup %5281 }
 0x125   :  { %v5284_v59 = vpop.eup %5283  ;;  %v481_v61 = vmul.f32 0.5, %v5282_v57 }
 0x126   :  { %v480_v1 = vmul.f32 0.5, %v5284_v59  ;;  %v5286_v22 = vpop.eup %5285  ;;  %v6983_v59 = vld [vmem:[#allocation24_spill] sm:$0xff] }
 0x127   :  { %v484_v16 = vadd.f32 0.5, %v481_v61  ;;  %v5288_v12 = vpop.eup %5287  ;;  %v6981_v61 = vmov 0.0|0.0  }
 0x128   :  { %v483_v63 = vadd.f32 0.5, %v480_v1  ;;  %v482_v62 = vmul.f32 0.5, %v5288_v12  ;;  %v6980_v1 = vmov 0.0  }
 0x129   :  { %v486_v6 = vmul.f32 0.0, %v484_v16 }
 0x12a   :  { %v487_v25 = vmul.f32 %v5286_v22, %v483_v63  ;;  %v485_v29 = vadd.f32 0.5, %v482_v62  ;;  %v3927_v63 = vld [vmem:[%s6916_s0 + $0x2] sm:$0x3] }
 0x12c   :  { %v5974_v7 = vadd.f32 %v487_v25, %v486_v6 }
 0x12e   :  { %5289 = vtanh.f32 %v5974_v7 }
 0x138   :  { %v5290_v33 = vpop.eup %5289 }
 0x139   :  { %v5977_v39 = vmul.f32 %v5290_v33, %v485_v29 }
 0x13b   :  { %6979 = vst [vmem:[#allocation26_spill] sm:$0xff] %v5977_v39  ;;  %4220 = vmatmul.mubr.f32.vlgmr.msra.gmra.mrb[2].mxu0 %v5977_v39  ;;  %634 = vmatmul.mubr.f32.vlgmr.msra.gmra.mrb[2].mxu1 %v5977_v39 }
 0x13c   :  { %4590 = vmatpush1.bf16.msra.mxu0 %v5607_v14  ;;  %3929 = vmatpush1.msk.msra.mxu1 %vm321_vm0, %v5854_v47 }
 0x13d   :  { %4592 = vmatprep.subr.bf16.mxu0 %v5622_v19  ;;  %778 = vmatprep.mubr.f32.mxu1 %v6980_v1 }
 0x13e   :  { %704 = vmatprep.mubr.f32.mxu0 %v6980_v1  ;;  %4619 = vmatprep.subr.bf16.mxu1 %v6981_v61 }
 0x140   :  { %4594 = vmatpush1.bf16.msra.mxu0 %v5647_v27 }
 0x141   :  { %4596 = vmatprep.subr.bf16.mxu0 %v5660_v32 }
 0x143   :  { %3930 = vmatmul.mubr.msk.f32.vlgmr.msra.gmra.mrb[2].mxu1 %vm317_vm1, %v3927_v63 }
 0x144   :  { %4598 = vmatpush1.bf16.msra.mxu0 %v5685_v40  ;;  %4621 = vmatpush3.bf16.msra.mxu1 %v5915_v60 }
 0x145   :  { %4600 = vmatprep.subr.bf16.mxu0 %v5699_v45  ;;  %4622 = vmatprep.subr.bf16.mxu1 %v6981_v61 }
 0x146   :  { %4254 = vmatprep.mubr.msk.f32.mxu1 %vm5481_vm2, %v6980_v1 }
 0x148   :  { %4602 = vmatpush1.bf16.msra.mxu0 %v5724_v53  ;;  %4624 = vmatpush3.bf16.msra.mxu1 %v5920_v4 }
 0x149   :  { %4604 = vmatprep.subr.bf16.mxu0 %v5738_v58  ;;  %4625 = vmatprep.subr.bf16.mxu1 %v6981_v61 }
 0x14c   :  { %4606 = vmatpush1.bf16.msra.mxu0 %v5760_v2  ;;  %4627 = vmatpush3.bf16.msra.mxu1 %v5924_v11 }
 0x14d   :  { %4608 = vmatprep.subr.bf16.mxu0 %v5774_v8  ;;  %4628 = vmatprep.subr.bf16.mxu1 %v6981_v61 }
 0x150   :  { %4610 = vmatpush1.bf16.msra.mxu0 %v5796_v20  ;;  %4630 = vmatpush3.bf16.msra.mxu1 %v5928_v15 }
 0x151   :  { %4612 = vmatprep.subr.bf16.mxu0 %v5810_v26  ;;  %4631 = vmatprep.subr.bf16.mxu1 %v6981_v61 }
 0x154   :  { %4614 = vmatpush1.bf16.msra.mxu0 %v5832_v37  ;;  %4633 = vmatpush3.bf16.msra.mxu1 %v5932_v24 }
 0x155   :  { %4616 = vmatprep.subr.bf16.mxu0 %v5843_v43  ;;  %4634 = vmatprep.subr.bf16.mxu1 %v6981_v61 }
 0x158   :  { %4618 = vmatpush1.bf16.msra.mxu0 %v5866_v50  ;;  %4636 = vmatpush3.bf16.msra.mxu1 %v5936_v30 }
 0x159   :  { %3931 = vmatprep.subr.msk.mxu0 %vm321_vm0, %v5875_v55  ;;  %4637 = vmatprep.subr.bf16.mxu1 %v6981_v61 }
 0x15b   :  { %705 = vmatmul.mubr.f32.vlgmr.msra.gmra.mrb[4].mxu0 %v5977_v39  ;;  %v6984_v39 = vld [vmem:[#allocation23_spill] sm:$0xff] }
 0x15c   :  { %3932 = vmatpush1.msk.msra.mxu0 %vm321_vm0, %v5859_v48  ;;  %849 = vmatprep.mubr.f32.mxu0 %v6980_v1 }
 0x15d   :  { %4644 = vmatprep.subr.bf16.mxu0 %v5582_v5  ;;  %4639 = vmatpush3.bf16.msra.mxu1 %v5940_v34 }
 0x15e   :  { %4640 = vmatprep.subr.bf16.mxu1 %v6981_v61 }
 0x161   :  { %4642 = vmatpush3.bf16.msra.mxu1 %v5944_v44 }
 0x162   :  { %4676 = vmatprep.subr.bf16.mxu1 %v5593_v9 }
 0x163   :  { %3933 = vmatmul.mubr.msk.f32.vlgmr.msra.gmra.mrb[4].mxu0 %vm317_vm1, %v3927_v63 }
 0x164   :  { %4646 = vmatpush1.bf16.msra.mxu0 %v5595_v10  ;;  %1017 = vmatprep.mubr.f32.mxu0 %v6980_v1 }
 0x165   :  { %4648 = vmatprep.subr.bf16.mxu0 %v5620_v18 }
 0x168   :  { %4650 = vmatpush1.bf16.msra.mxu0 %v5634_v23 }
 0x169   :  { %4652 = vmatprep.subr.bf16.mxu0 %v5649_v28 }
 0x16c   :  { %4654 = vmatpush1.bf16.msra.mxu0 %v5672_v36 }
 0x16d   :  { %4656 = vmatprep.subr.bf16.mxu0 %v5687_v41 }
 0x170   :  { %4658 = vmatpush1.bf16.msra.mxu0 %v5720_v52 }
 0x171   :  { %4660 = vmatprep.subr.bf16.mxu0 %v5726_v54 }
 0x174   :  { %4662 = vmatpush1.bf16.msra.mxu0 %v5756_v0 }
 0x175   :  { %4664 = vmatprep.subr.bf16.mxu0 %v5762_v3 }
 0x178   :  { %4666 = vmatpush1.bf16.msra.mxu0 %v5792_v17 }
 0x179   :  { %4668 = vmatprep.subr.bf16.mxu0 %v5798_v21 }
 0x17c   :  { %4670 = vmatpush1.bf16.msra.mxu0 %v5828_v35 }
 0x17d   :  { %4672 = vmatprep.subr.bf16.mxu0 %v5834_v38 }
 0x180   :  { %4674 = vmatpush1.bf16.msra.mxu0 %v5862_v49 }
 0x181   :  { %3935 = vmatprep.subr.msk.mxu0 %vm321_vm0, %v5870_v51 }
 0x20e   :  { %v6049_v6 = vpop.f32.mrb[2].mxu0 }
 0x20f   :  { %6982 = vst [vmem:[#allocation27_spill] sm:$0xff] %v6049_v6  ;;  %v4221_v31 = vpop.f32.mrb[3].mxu0 }
 0x216   :  { %v780_v46 = vpop.f32.mrb[2].mxu1 }
 0x217   :  { %v782_v57 = vpop.f32.mrb[3].mxu1  ;;  %v856_v22 = vadd.f32 %v780_v46, %v5965_v13 }
 0x218   :  { %v857_v16 = vadd.f32 %v782_v57, %v6983_v59 }
 0x21a   :  { %5291 = vtanh.f32 %v857_v16 }
 0x21b   :  { %5293 = vtanh.f32 %v856_v22 }
 0x224   :  { %v5292_v25 = vpop.eup %5291 }
 0x225   :  { %v864_v12 = vmul.f32 0.5, %v5292_v25  ;;  %v5294_v29 = vpop.eup %5293 }
 0x227   :  { %v867_v62 = vadd.f32 0.5, %v864_v12 }
 0x229   :  { %v871_v33 = vmul.f32 %v5294_v29, %v867_v62 }
 0x236   :  { %v851_v63 = vpop.f32.mrb[4].mxu0 }
 0x237   :  { %v858_v56 = vadd.f32 %v851_v63, %v6984_v39  ;;  %v853_v51 = vpop.f32.mrb[5].mxu0 }
 0x238   :  { %v859_v31 = vadd.f32 %v853_v51, %v5971_v42  ;;  %v6985_v51 = vld [vmem:[#allocation19_spill] sm:$0xff] }
 0x239   :  { %5295 = vtanh.f32 %v858_v56  ;;  %v6986_v56 = vld [vmem:[#allocation20_spill] sm:$0xff] }
 0x23a   :  { %5297 = vtanh.f32 %v859_v31 }
 0x243   :  { %v5296_v6 = vpop.eup %5295 }
 0x244   :  { %v865_v49 = vmul.f32 0.5, %v5296_v6  ;;  %v5298_v22 = vpop.eup %5297  ;;  %v6988_v6 = vld [vmem:[#allocation27_spill] sm:$0xff] }
 0x245   :  { %v866_v25 = vmul.f32 0.5, %v5298_v22 }
 0x246   :  { %v868_v57 = vadd.f32 0.5, %v865_v49  ;;  %v3934_v49 = vld [vmem:[%s6916_s0 + $0x4] sm:$0x3] }
 0x247   :  { %v869_v12 = vadd.f32 0.5, %v866_v25 }
 0x248   :  { %v870_v46 = vmul.f32 %v868_v57, %v5974_v7  ;;  %v6134_v7 = vld [vmem:[%s6921_s5] ss:$0 sm:$0xff] }
 0x249   :  { %6987 = vst [vmem:[#allocation23_spill] sm:$0xff] %v6134_v7 }
 0x24a   :  { %v6056_v16 = vadd.f32 %v871_v33, %v870_v46  ;;  %v558_v33 = vadd.f32 %v6134_v7, %v6988_v6 }
 0x24c   :  { %5299 = vtanh.f32 %v6056_v16 }
 0x24d   :  { %5301 = vtanh.f32 %v558_v33 }
 0x256   :  { %v5300_v62 = vpop.eup %5299 }
 0x257   :  { %v6059_v29 = vmul.f32 %v5300_v62, %v869_v12  ;;  %v5302_v46 = vpop.eup %5301 }
 0x258   :  { %v562_v22 = vmul.f32 1.442695, %v5302_v46 }
 0x259   :  { %4255 = vmatmul.mubr.f32.vlgmr.msra.gmra.mrb[4].mxu1 %v6059_v29  ;;  %1018 = vmatmul.mubr.f32.vlgmr.msra.gmra.mrb[6].mxu0 %v6059_v29 }
 0x25a   :  { %4678 = vmatpush1.bf16.msra.mxu1 %v5607_v14  ;;  %3936 = vmatpush1.msk.msra.mxu0 %vm321_vm0, %v5854_v47 }
 0x25b   :  { %4680 = vmatprep.subr.bf16.mxu1 %v5622_v19  ;;  %1162 = vmatprep.mubr.f32.mxu0 %v6980_v1 }
 0x25c   :  { %1088 = vmatprep.mubr.f32.mxu1 %v6980_v1  ;;  %4707 = vmatprep.subr.bf16.mxu0 %v6981_v61 }
 0x25e   :  { %4682 = vmatpush1.bf16.msra.mxu1 %v5647_v27 }
 0x25f   :  { %4684 = vmatprep.subr.bf16.mxu1 %v5660_v32 }
 0x261   :  { %3937 = vmatmul.mubr.msk.f32.vlgmr.msra.gmra.mrb[6].mxu0 %vm317_vm1, %v3934_v49 }
 0x262   :  { %4686 = vmatpush1.bf16.msra.mxu1 %v5685_v40  ;;  %4709 = vmatpush3.bf16.msra.mxu0 %v5915_v60 }
 0x263   :  { %4688 = vmatprep.subr.bf16.mxu1 %v5699_v45  ;;  %4710 = vmatprep.subr.bf16.mxu0 %v6981_v61 }
 0x264   :  { %4289 = vmatprep.mubr.msk.f32.mxu0 %vm5481_vm2, %v6980_v1 }
 0x266   :  { %4690 = vmatpush1.bf16.msra.mxu1 %v5724_v53  ;;  %4712 = vmatpush3.bf16.msra.mxu0 %v5920_v4 }
 0x267   :  { %4692 = vmatprep.subr.bf16.mxu1 %v5738_v58  ;;  %4713 = vmatprep.subr.bf16.mxu0 %v6981_v61 }
 0x26a   :  { %4694 = vmatpush1.bf16.msra.mxu1 %v5760_v2  ;;  %4715 = vmatpush3.bf16.msra.mxu0 %v5924_v11 }
 0x26b   :  { %4696 = vmatprep.subr.bf16.mxu1 %v5774_v8  ;;  %4716 = vmatprep.subr.bf16.mxu0 %v6981_v61 }
 0x26e   :  { %4698 = vmatpush1.bf16.msra.mxu1 %v5796_v20  ;;  %4718 = vmatpush3.bf16.msra.mxu0 %v5928_v15 }
 0x26f   :  { %4700 = vmatprep.subr.bf16.mxu1 %v5810_v26  ;;  %4719 = vmatprep.subr.bf16.mxu0 %v6981_v61 }
 0x272   :  { %4702 = vmatpush1.bf16.msra.mxu1 %v5832_v37  ;;  %4721 = vmatpush3.bf16.msra.mxu0 %v5932_v24 }
 0x273   :  { %4704 = vmatprep.subr.bf16.mxu1 %v5843_v43  ;;  %4722 = vmatprep.subr.bf16.mxu0 %v6981_v61 }
 0x276   :  { %4706 = vmatpush1.bf16.msra.mxu1 %v5866_v50  ;;  %4724 = vmatpush3.bf16.msra.mxu0 %v5936_v30 }
 0x277   :  { %3938 = vmatprep.subr.msk.mxu1 %vm321_vm0, %v5875_v55  ;;  %4725 = vmatprep.subr.bf16.mxu0 %v6981_v61 }
 0x279   :  { %1089 = vmatmul.mubr.f32.vlgmr.msra.gmra.mrb[6].mxu1 %v6059_v29 }
 0x27a   :  { %3939 = vmatpush1.msk.msra.mxu1 %vm321_vm0, %v5859_v48  ;;  %1233 = vmatprep.mubr.f32.mxu1 %v6980_v1 }
 0x27b   :  { %4732 = vmatprep.subr.bf16.mxu1 %v5582_v5  ;;  %4727 = vmatpush3.bf16.msra.mxu0 %v5940_v34 }
 0x27c   :  { %4728 = vmatprep.subr.bf16.mxu0 %v6981_v61 }
 0x27f   :  { %4730 = vmatpush3.bf16.msra.mxu0 %v5944_v44 }
 0x280   :  { %4764 = vmatprep.subr.bf16.mxu0 %v5593_v9 }
 0x281   :  { %3940 = vmatmul.mubr.msk.f32.vlgmr.msra.gmra.mrb[6].mxu1 %vm317_vm1, %v3934_v49 }
 0x282   :  { %4734 = vmatpush1.bf16.msra.mxu1 %v5595_v10  ;;  %1401 = vmatprep.mubr.f32.mxu1 %v6980_v1 }
 0x283   :  { %4736 = vmatprep.subr.bf16.mxu1 %v5620_v18 }
 0x286   :  { %4738 = vmatpush1.bf16.msra.mxu1 %v5634_v23 }
 0x287   :  { %4740 = vmatprep.subr.bf16.mxu1 %v5649_v28 }
 0x28a   :  { %4742 = vmatpush1.bf16.msra.mxu1 %v5672_v36 }
 0x28b   :  { %4744 = vmatprep.subr.bf16.mxu1 %v5687_v41 }
 0x28e   :  { %4746 = vmatpush1.bf16.msra.mxu1 %v5720_v52 }
 0x28f   :  { %4748 = vmatprep.subr.bf16.mxu1 %v5726_v54 }
 0x292   :  { %4750 = vmatpush1.bf16.msra.mxu1 %v5756_v0 }
 0x293   :  { %4752 = vmatprep.subr.bf16.mxu1 %v5762_v3 }
 0x296   :  { %4754 = vmatpush1.bf16.msra.mxu1 %v5792_v17 }
 0x297   :  { %4756 = vmatprep.subr.bf16.mxu1 %v5798_v21  ;;  %v6992_v21 = vld [vmem:[#allocation22_spill] sm:$0xff] }
 0x29a   :  { %4758 = vmatpush1.bf16.msra.mxu1 %v5828_v35 }
 0x29b   :  { %4760 = vmatprep.subr.bf16.mxu1 %v5834_v38 }
 0x29e   :  { %4762 = vmatpush1.bf16.msra.mxu1 %v6985_v51  ;;  %v5482_v51 = vmov 1966171168  }
 0x29f   :  { %3942 = vmatprep.subr.msk.mxu1 %vm321_vm0, %v6986_v56  ;;  %v3260_v38 = vunpack.c.l.s4 %v5482_v51 }
 0x2a1   :  { %v3261_v33 = vunpack.c.0.s8 %v3260_v38 }
 0x32c   :  { %v941_v63 = vpop.f32.mrb[4].mxu1 }
 0x32d   :  { %v942_v31 = vadd.f32 %v6134_v7, %v941_v63  ;;  %v4256_v57 = vpop.f32.mrb[5].mxu1 }
 0x32e   :  { %v6989_v57 = vld [vmem:[#allocation21_spill] sm:$0xff] }
 0x32f   :  { %5303 = vtanh.f32 %v942_v31  ;;  %v6142_v31 = vsub.s32 %v3261_v33, %v6989_v57 }
 0x330   :  { %5305 = vpow2.f32 %v562_v22 }
 0x334   :  { %v1164_v25 = vpop.f32.mrb[6].mxu0 }
 0x335   :  { %v1166_v12 = vpop.f32.mrb[7].mxu0  ;;  %v1240_v49 = vadd.f32 %v1164_v25, %v5965_v13  ;;  %v6990_v25 = vld [vmem:[#allocation26_spill] sm:$0xff] }
 0x336   :  { %v1241_v62 = vadd.f32 %v1166_v12, %v6983_v59 }
 0x338   :  { %5307 = vtanh.f32 %v1241_v62 }
 0x339   :  { %v5304_v56 = vpop.eup %5303  ;;  %5309 = vtanh.f32 %v1240_v49 }
 0x33a   :  { %v946_v6 = vmul.f32 1.442695, %v5304_v56  ;;  %v5306_v63 = vpop.eup %5305 }
 0x33b   :  { %v3265_v12 = vrot.slane %v5306_v63, %v6142_v31  ;;  %v565_v62 = vmul.f32 %v5306_v63, %v6990_v25 }
 0x33c   :  { %5311 = vpow2.f32 %v946_v6 }
 0x33d   :  { %v3266_v49 = vcombine.high %v3265_v12, %v3265_v12 }
 0x342   :  { %v5308_v46 = vpop.eup %5307 }
 0x343   :  { %v1248_v7 = vmul.f32 0.5, %v5308_v46  ;;  %v5310_v35 = vpop.eup %5309  ;;  %v3273_v46 = vrot.slane %v3265_v12, %v6142_v31 }
 0x345   :  { %v1251_v22 = vadd.f32 0.5, %v1248_v7 }
 0x346   :  { %v5312_v59 = vpop.eup %5311 }
 0x347   :  { %v6146_v13 = vadd.f32 %v5312_v59, %v5306_v63  ;;  %v3290_v51 = vrot.slane %v5312_v59, %v6142_v31  ;;  %v1255_v56 = vmul.f32 %v5310_v35, %v1251_v22  ;;  %v949_v38 = vmul.f32 %v5312_v59, %v6059_v29 }
 0x348   :  { %v3280_v63 = vrot.slane %v3266_v49, %v6142_v31 }
 0x349   :  { %6991 = vst [vmem:[#allocation27_spill] sm:$0xff] %v6146_v13  ;;  %v3291_v6 = vcombine.high %v3290_v51, %v3290_v51  ;;  %v3298_v33 = vrot.slane %v3290_v51, %v6142_v31  ;;  %v6151_v57 = vadd.f32 %v949_v38, %v565_v62 }
 0x34b   :  { %v3305_v7 = vrot.slane %v3291_v6, %v6142_v31  ;;  %v3447_v25 = vrot.slane %v3298_v33, %v6992_v21 }
 0x34d   :  { %v3451_v13 = vrot.slane %v3305_v7, %v6992_v21  ;;  %v6158_v35 = vsel %vm3514_vm3, %v3273_v46, %v3447_v25 }
 0x34f   :  { %v6160_v59 = vsel %vm3514_vm3, %v3280_v63, %v3451_v13 }
 0x354   :  { %v1235_v29 = vpop.f32.mrb[6].mxu1 }
 0x355   :  { %v1242_v22 = vadd.f32 %v1235_v29, %v6984_v39  ;;  %v1237_v62 = vpop.f32.mrb[7].mxu1  ;;  %v6994_v29 = vld [vmem:[#allocation17_spill] sm:$0xff] }
 0x356   :  { %v1243_v51 = vadd.f32 %v1237_v62, %v5971_v42  ;;  %v6996_v62 = vld [vmem:[#allocation19_spill] sm:$0xff] }
 0x357   :  { %5313 = vtanh.f32 %v1242_v22  ;;  %v6995_v22 = vld [vmem:[#allocation18_spill] sm:$0xff] }
 0x358   :  { %5315 = vtanh.f32 %v1243_v51  ;;  %v6997_v51 = vld [vmem:[#allocation20_spill] sm:$0xff] }
 0x361   :  { %v5314_v12 = vpop.eup %5313 }
 0x362   :  { %v1249_v38 = vmul.f32 0.5, %v5314_v12  ;;  %v5316_v46 = vpop.eup %5315 }
 0x363   :  { %v1250_v13 = vmul.f32 0.5, %v5316_v46 }
 0x364   :  { %v1252_v6 = vadd.f32 0.5, %v1249_v38  ;;  %v6998_v38 = vld [vmem:[#allocation23_spill] sm:$0xff] }
 0x365   :  { %v1253_v7 = vadd.f32 0.5, %v1250_v13 }
 0x366   :  { %v1254_v33 = vmul.f32 %v1252_v6, %v6056_v16  ;;  %v3941_v16 = vld [vmem:[%s6916_s0 + $0x6] sm:$0x3] }
 0x368   :  { %v6165_v49 = vadd.f32 %v1255_v56, %v1254_v33  ;;  %v6993_v56 = vld [vmem:[#allocation16_spill] sm:$0xff] }
 0x36a   :  { %5317 = vtanh.f32 %v6165_v49 }
 0x374   :  { %v5318_v25 = vpop.eup %5317 }
 0x375   :  { %v6168_v63 = vmul.f32 %v5318_v25, %v1253_v7  ;;  %v6999_v7 = vld [vmem:[#allocation24_spill] sm:$0xff] }
 0x377   :  { %4290 = vmatmul.mubr.f32.vlgmr.msra.gmra.mrb[8].mxu0 %v6168_v63  ;;  %1402 = vmatmul.mubr.f32.vlgmr.msra.gmra.mrb[8].mxu1 %v6168_v63 }
 0x378   :  { %4766 = vmatpush1.bf16.msra.mxu0 %v5607_v14  ;;  %3943 = vmatpush1.msk.msra.mxu1 %vm321_vm0, %v5854_v47 }
 0x379   :  { %4768 = vmatprep.subr.bf16.mxu0 %v5622_v19  ;;  %1546 = vmatprep.mubr.f32.mxu1 %v6980_v1 }
 0x37a   :  { %1472 = vmatprep.mubr.f32.mxu0 %v6980_v1  ;;  %4795 = vmatprep.subr.bf16.mxu1 %v6981_v61 }
 0x37c   :  { %4770 = vmatpush1.bf16.msra.mxu0 %v5647_v27 }
 0x37d   :  { %4772 = vmatprep.subr.bf16.mxu0 %v5660_v32 }
 0x37f   :  { %3944 = vmatmul.mubr.msk.f32.vlgmr.msra.gmra.mrb[8].mxu1 %vm317_vm1, %v3941_v16 }
 0x380   :  { %4774 = vmatpush1.bf16.msra.mxu0 %v5685_v40  ;;  %4797 = vmatpush3.bf16.msra.mxu1 %v5915_v60 }
 0x381   :  { %4776 = vmatprep.subr.bf16.mxu0 %v5699_v45  ;;  %4798 = vmatprep.subr.bf16.mxu1 %v6981_v61 }
 0x382   :  { %4324 = vmatprep.mubr.msk.f32.mxu1 %vm5481_vm2, %v6980_v1 }
 0x384   :  { %4778 = vmatpush1.bf16.msra.mxu0 %v5724_v53  ;;  %4800 = vmatpush3.bf16.msra.mxu1 %v5920_v4 }
 0x385   :  { %4780 = vmatprep.subr.bf16.mxu0 %v5738_v58  ;;  %4801 = vmatprep.subr.bf16.mxu1 %v6981_v61 }
 0x388   :  { %4782 = vmatpush1.bf16.msra.mxu0 %v5760_v2  ;;  %4803 = vmatpush3.bf16.msra.mxu1 %v5924_v11 }
 0x389   :  { %4784 = vmatprep.subr.bf16.mxu0 %v5774_v8  ;;  %4804 = vmatprep.subr.bf16.mxu1 %v6981_v61 }
 0x38c   :  { %4786 = vmatpush1.bf16.msra.mxu0 %v5796_v20  ;;  %4806 = vmatpush3.bf16.msra.mxu1 %v5928_v15 }
 0x38d   :  { %4788 = vmatprep.subr.bf16.mxu0 %v5810_v26  ;;  %4807 = vmatprep.subr.bf16.mxu1 %v6981_v61 }
 0x390   :  { %4790 = vmatpush1.bf16.msra.mxu0 %v5832_v37  ;;  %4809 = vmatpush3.bf16.msra.mxu1 %v5932_v24 }
 0x391   :  { %4792 = vmatprep.subr.bf16.mxu0 %v5843_v43  ;;  %4810 = vmatprep.subr.bf16.mxu1 %v6981_v61 }
 0x394   :  { %4794 = vmatpush1.bf16.msra.mxu0 %v5866_v50  ;;  %4812 = vmatpush3.bf16.msra.mxu1 %v5936_v30 }
 0x395   :  { %3945 = vmatprep.subr.msk.mxu0 %vm321_vm0, %v5875_v55  ;;  %4813 = vmatprep.subr.bf16.mxu1 %v6981_v61 }
 0x397   :  { %1473 = vmatmul.mubr.f32.vlgmr.msra.gmra.mrb[10].mxu0 %v6168_v63 }
 0x398   :  { %3946 = vmatpush1.msk.msra.mxu0 %vm321_vm0, %v5859_v48  ;;  %1617 = vmatprep.mubr.f32.mxu0 %v6980_v1 }
 0x399   :  { %4820 = vmatprep.subr.bf16.mxu0 %v5582_v5  ;;  %4815 = vmatpush3.bf16.msra.mxu1 %v5940_v34 }
 0x39a   :  { %4816 = vmatprep.subr.bf16.mxu1 %v6981_v61 }
 0x39d   :  { %4818 = vmatpush3.bf16.msra.mxu1 %v5944_v44 }
 0x39e   :  { %4852 = vmatprep.subr.bf16.mxu1 %v5593_v9 }
 0x39f   :  { %3947 = vmatmul.mubr.msk.f32.vlgmr.msra.gmra.mrb[10].mxu0 %vm317_vm1, %v3941_v16  ;;  %v7000_v16 = vld [vmem:[#allocation25_spill] sm:$0xff] }
 0x3a0   :  { %4822 = vmatpush1.bf16.msra.mxu0 %v5595_v10  ;;  %1785 = vmatprep.mubr.f32.mxu0 %v6980_v1 }
 0x3a1   :  { %4824 = vmatprep.subr.bf16.mxu0 %v5620_v18 }
 0x3a4   :  { %4826 = vmatpush1.bf16.msra.mxu0 %v5634_v23 }
 0x3a5   :  { %4828 = vmatprep.subr.bf16.mxu0 %v5649_v28 }
 0x3a8   :  { %4830 = vmatpush1.bf16.msra.mxu0 %v5672_v36 }
 0x3a9   :  { %4832 = vmatprep.subr.bf16.mxu0 %v5687_v41 }
 0x3ac   :  { %4834 = vmatpush1.bf16.msra.mxu0 %v5720_v52 }
 0x3ad   :  { %4836 = vmatprep.subr.bf16.mxu0 %v5726_v54 }
 0x3b0   :  { %4838 = vmatpush1.bf16.msra.mxu0 %v5756_v0 }
 0x3b1   :  { %4840 = vmatprep.subr.bf16.mxu0 %v5762_v3 }
 0x3b4   :  { %4842 = vmatpush1.bf16.msra.mxu0 %v5792_v17 }
 0x3b5   :  { %4844 = vmatprep.subr.bf16.mxu0 %v6993_v56 }
 0x3b8   :  { %4846 = vmatpush1.bf16.msra.mxu0 %v6994_v29 }
 0x3b9   :  { %4848 = vmatprep.subr.bf16.mxu0 %v6995_v22 }
 0x3bc   :  { %4850 = vmatpush1.bf16.msra.mxu0 %v6996_v62 }
 0x3bd   :  { %3949 = vmatprep.subr.msk.mxu0 %vm321_vm0, %v6997_v51 }
 0x44a   :  { %v1325_v12 = vpop.f32.mrb[8].mxu0 }
 0x44b   :  { %v1326_v6 = vadd.f32 %v6998_v38, %v1325_v12  ;;  %v4291_v33 = vpop.f32.mrb[9].mxu0 }
 0x44d   :  { %5319 = vtanh.f32 %v1326_v6  ;;  %v7001_v6 = vld [vmem:[#allocation27_spill] sm:$0xff] }
 0x452   :  { %v1548_v46 = vpop.f32.mrb[8].mxu1 }
 0x453   :  { %v1550_v13 = vpop.f32.mrb[9].mxu1  ;;  %v1624_v56 = vadd.f32 %v1548_v46, %v7000_v16 }
 0x454   :  { %v1625_v25 = vadd.f32 %v1550_v13, %v6999_v7 }
 0x456   :  { %5321 = vtanh.f32 %v1625_v25 }
 0x457   :  { %v5320_v29 = vpop.eup %5319  ;;  %5323 = vtanh.f32 %v1624_v56 }
 0x458   :  { %v1330_v17 = vmul.f32 1.442695, %v5320_v29 }
 0x45a   :  { %5325 = vpow2.f32 %v1330_v17 }
 0x460   :  { %v5322_v62 = vpop.eup %5321 }
 0x461   :  { %v1632_v22 = vmul.f32 0.5, %v5322_v62  ;;  %v5324_v3 = vpop.eup %5323 }
 0x463   :  { %v1635_v51 = vadd.f32 0.5, %v1632_v22 }
 0x464   :  { %v5326_v0 = vpop.eup %5325 }
 0x465   :  { %v3313_v12 = vrot.slane %v5326_v0, %v6142_v31  ;;  %v1639_v33 = vmul.f32 %v5324_v3, %v1635_v51  ;;  %v6245_v38 = vadd.f32 %v5326_v0, %v7001_v6  ;;  %v1333_v13 = vmul.f32 %v5326_v0, %v6168_v63 }
 0x467   :  { %v3314_v7 = vcombine.high %v3313_v12, %v3313_v12  ;;  %v3321_v46 = vrot.slane %v3313_v12, %v6142_v31  ;;  %v6250_v29 = vadd.f32 %v1333_v13, %v6151_v57 }
 0x469   :  { %v3328_v17 = vrot.slane %v3314_v7, %v6142_v31  ;;  %v3457_v56 = vrot.slane %v3321_v46, %v6992_v21 }
 0x46b   :  { %v3461_v22 = vrot.slane %v3328_v17, %v6992_v21  ;;  %v6256_v3 = vsel %vm3517_vm4, %v6158_v35, %v3457_v56 }
 0x46d   :  { %v6259_v62 = vsel %vm3517_vm4, %v6160_v59, %v3461_v22  ;;  %v7005_v22 = vld [vmem:[#allocation16_spill] sm:$0xff] }
 0x472   :  { %v1619_v0 = vpop.f32.mrb[10].mxu0 }
 0x473   :  { %v1626_v63 = vadd.f32 %v1619_v0, %v6984_v39  ;;  %v1621_v51 = vpop.f32.mrb[11].mxu0  ;;  %v7006_v0 = vld [vmem:[#allocation17_spill] sm:$0xff] }
 0x474   :  { %v1627_v57 = vadd.f32 %v1621_v51, %v5971_v42  ;;  %v7008_v51 = vld [vmem:[#allocation19_spill] sm:$0xff] }
 0x475   :  { %5327 = vtanh.f32 %v1626_v63  ;;  %v7007_v63 = vld [vmem:[#allocation18_spill] sm:$0xff] }
 0x476   :  { %5329 = vtanh.f32 %v1627_v57  ;;  %v7009_v57 = vld [vmem:[#allocation20_spill] sm:$0xff] }
 0x47f   :  { %v5328_v25 = vpop.eup %5327 }
 0x480   :  { %v1633_v12 = vmul.f32 0.5, %v5328_v25  ;;  %v5330_v35 = vpop.eup %5329 }
 0x481   :  { %v1634_v59 = vmul.f32 0.5, %v5330_v35 }
 0x482   :  { %v1636_v7 = vadd.f32 0.5, %v1633_v12  ;;  %v7010_v12 = vld [vmem:[#allocation23_spill] sm:$0xff] }
 0x483   :  { %v1637_v46 = vadd.f32 0.5, %v1634_v59 }
 0x484   :  { %v1638_v6 = vmul.f32 %v1636_v7, %v6165_v49  ;;  %v3948_v49 = vld [vmem:[%s6916_s0 + $0x8] sm:$0x3] }
 0x486   :  { %v6264_v13 = vadd.f32 %v1639_v33, %v1638_v6  ;;  %v7004_v33 = vld [vmem:[#allocation15_spill] sm:$0xff] }
 0x488   :  { %5331 = vtanh.f32 %v6264_v13 }
 0x492   :  { %v5332_v17 = vpop.eup %5331 }
 0x493   :  { %v6267_v56 = vmul.f32 %v5332_v17, %v1637_v46  ;;  %v7011_v46 = vld [vmem:[#allocation24_spill] sm:$0xff] }
 0x495   :  { %4325 = vmatmul.mubr.f32.vlgmr.msra.gmra.mrb[10].mxu1 %v6267_v56  ;;  %1786 = vmatmul.mubr.f32.vlgmr.msra.gmra.mrb[12].mxu0 %v6267_v56 }
 0x496   :  { %4854 = vmatpush1.bf16.msra.mxu1 %v5607_v14  ;;  %3950 = vmatpush1.msk.msra.mxu0 %vm321_vm0, %v5854_v47  ;;  %v7002_v47 = vld [vmem:[#allocation13_spill] sm:$0xff] }
 0x497   :  { %4856 = vmatprep.subr.bf16.mxu1 %v5622_v19  ;;  %1930 = vmatprep.mubr.f32.mxu0 %v6980_v1 }
 0x498   :  { %1856 = vmatprep.mubr.f32.mxu1 %v6980_v1  ;;  %4883 = vmatprep.subr.bf16.mxu0 %v6981_v61 }
 0x49a   :  { %4858 = vmatpush1.bf16.msra.mxu1 %v5647_v27 }
 0x49b   :  { %4860 = vmatprep.subr.bf16.mxu1 %v5660_v32 }
 0x49d   :  { %3951 = vmatmul.mubr.msk.f32.vlgmr.msra.gmra.mrb[12].mxu0 %vm317_vm1, %v3948_v49 }
 0x49e   :  { %4862 = vmatpush1.bf16.msra.mxu1 %v5685_v40  ;;  %4885 = vmatpush3.bf16.msra.mxu0 %v5915_v60 }
 0x49f   :  { %4864 = vmatprep.subr.bf16.mxu1 %v5699_v45  ;;  %4886 = vmatprep.subr.bf16.mxu0 %v6981_v61 }
 0x4a0   :  { %4359 = vmatprep.mubr.msk.f32.mxu0 %vm5481_vm2, %v6980_v1 }
 0x4a2   :  { %4866 = vmatpush1.bf16.msra.mxu1 %v5724_v53  ;;  %4888 = vmatpush3.bf16.msra.mxu0 %v5920_v4 }
 0x4a3   :  { %4868 = vmatprep.subr.bf16.mxu1 %v5738_v58  ;;  %4889 = vmatprep.subr.bf16.mxu0 %v6981_v61 }
 0x4a6   :  { %4870 = vmatpush1.bf16.msra.mxu1 %v5760_v2  ;;  %4891 = vmatpush3.bf16.msra.mxu0 %v5924_v11 }
 0x4a7   :  { %4872 = vmatprep.subr.bf16.mxu1 %v5774_v8  ;;  %4892 = vmatprep.subr.bf16.mxu0 %v6981_v61 }
 0x4aa   :  { %4874 = vmatpush1.bf16.msra.mxu1 %v5796_v20  ;;  %4894 = vmatpush3.bf16.msra.mxu0 %v5928_v15 }
 0x4ab   :  { %4876 = vmatprep.subr.bf16.mxu1 %v5810_v26  ;;  %4895 = vmatprep.subr.bf16.mxu0 %v6981_v61 }
 0x4ae   :  { %4878 = vmatpush1.bf16.msra.mxu1 %v5832_v37  ;;  %4897 = vmatpush3.bf16.msra.mxu0 %v5932_v24 }
 0x4af   :  { %4880 = vmatprep.subr.bf16.mxu1 %v5843_v43  ;;  %4898 = vmatprep.subr.bf16.mxu0 %v6981_v61 }
 0x4b2   :  { %4882 = vmatpush1.bf16.msra.mxu1 %v5866_v50  ;;  %4900 = vmatpush3.bf16.msra.mxu0 %v5936_v30 }
 0x4b3   :  { %3952 = vmatprep.subr.msk.mxu1 %vm321_vm0, %v5875_v55  ;;  %4901 = vmatprep.subr.bf16.mxu0 %v6981_v61 }
 0x4b5   :  { %1857 = vmatmul.mubr.f32.vlgmr.msra.gmra.mrb[12].mxu1 %v6267_v56 }
 0x4b6   :  { %3953 = vmatpush1.msk.msra.mxu1 %vm321_vm0, %v5859_v48  ;;  %2001 = vmatprep.mubr.f32.mxu1 %v6980_v1  ;;  %v7003_v48 = vld [vmem:[#allocation14_spill] sm:$0xff] }
 0x4b7   :  { %4908 = vmatprep.subr.bf16.mxu1 %v5582_v5  ;;  %4903 = vmatpush3.bf16.msra.mxu0 %v5940_v34 }
 0x4b8   :  { %4904 = vmatprep.subr.bf16.mxu0 %v6981_v61 }
 0x4bb   :  { %4906 = vmatpush3.bf16.msra.mxu0 %v5944_v44 }
 0x4bc   :  { %4940 = vmatprep.subr.bf16.mxu0 %v5593_v9 }
 0x4bd   :  { %3954 = vmatmul.mubr.msk.f32.vlgmr.msra.gmra.mrb[12].mxu1 %vm317_vm1, %v3948_v49 }
 0x4be   :  { %4910 = vmatpush1.bf16.msra.mxu1 %v5595_v10  ;;  %2169 = vmatprep.mubr.f32.mxu1 %v6980_v1 }
 0x4bf   :  { %4912 = vmatprep.subr.bf16.mxu1 %v5620_v18 }
 0x4c2   :  { %4914 = vmatpush1.bf16.msra.mxu1 %v5634_v23 }
 0x4c3   :  { %4916 = vmatprep.subr.bf16.mxu1 %v5649_v28 }
 0x4c6   :  { %4918 = vmatpush1.bf16.msra.mxu1 %v5672_v36 }
 0x4c7   :  { %4920 = vmatprep.subr.bf16.mxu1 %v5687_v41 }
 0x4ca   :  { %4922 = vmatpush1.bf16.msra.mxu1 %v5720_v52 }
 0x4cb   :  { %4924 = vmatprep.subr.bf16.mxu1 %v5726_v54 }
 0x4ce   :  { %4926 = vmatpush1.bf16.msra.mxu1 %v7002_v47 }
 0x4cf   :  { %4928 = vmatprep.subr.bf16.mxu1 %v7003_v48 }
 0x4d2   :  { %4930 = vmatpush1.bf16.msra.mxu1 %v7004_v33 }
 0x4d3   :  { %4932 = vmatprep.subr.bf16.mxu1 %v7005_v22 }
 0x4d6   :  { %4934 = vmatpush1.bf16.msra.mxu1 %v7006_v0 }
 0x4d7   :  { %4936 = vmatprep.subr.bf16.mxu1 %v7007_v63 }
 0x4da   :  { %4938 = vmatpush1.bf16.msra.mxu1 %v7008_v51 }
 0x4db   :  { %3956 = vmatprep.subr.msk.mxu1 %vm321_vm0, %v7009_v57 }
 0x568   :  { %v1709_v25 = vpop.f32.mrb[10].mxu1 }
 0x569   :  { %v1710_v7 = vadd.f32 %v7010_v12, %v1709_v25  ;;  %v4326_v6 = vpop.f32.mrb[11].mxu1 }
 0x56b   :  { %5333 = vtanh.f32 %v1710_v7 }
 0x570   :  { %v1932_v35 = vpop.f32.mrb[12].mxu0 }
 0x571   :  { %v1934_v59 = vpop.f32.mrb[13].mxu0  ;;  %v2008_v49 = vadd.f32 %v1932_v35, %v7000_v16 }
 0x572   :  { %v2009_v17 = vadd.f32 %v1934_v59, %v7011_v46 }
 0x574   :  { %5335 = vtanh.f32 %v2009_v17 }
 0x575   :  { %v5334_v0 = vpop.eup %5333  ;;  %5337 = vtanh.f32 %v2008_v49 }
 0x576   :  { %v1714_v22 = vmul.f32 1.442695, %v5334_v0 }
 0x578   :  { %5339 = vpow2.f32 %v1714_v22 }
 0x57e   :  { %v5336_v51 = vpop.eup %5335 }
 0x57f   :  { %v2016_v63 = vmul.f32 0.5, %v5336_v51  ;;  %v5338_v33 = vpop.eup %5337 }
 0x581   :  { %v2019_v57 = vadd.f32 0.5, %v2016_v63 }
 0x582   :  { %v5340_v48 = vpop.eup %5339 }
 0x583   :  { %v3336_v25 = vrot.slane %v5340_v48, %v6142_v31  ;;  %v2023_v6 = vmul.f32 %v5338_v33, %v2019_v57  ;;  %v6344_v7 = vadd.f32 %v5340_v48, %v6245_v38  ;;  %v1717_v59 = vmul.f32 %v5340_v48, %v6267_v56 }
 0x585   :  { %v3337_v46 = vcombine.high %v3336_v25, %v3336_v25  ;;  %v3344_v35 = vrot.slane %v3336_v25, %v6142_v31  ;;  %v6349_v0 = vadd.f32 %v1717_v59, %v6250_v29 }
 0x587   :  { %v3351_v22 = vrot.slane %v3337_v46, %v6142_v31  ;;  %v3467_v63 = vrot.slane %v3344_v35, %v6992_v21 }
 0x589   :  { %v3471_v51 = vrot.slane %v3351_v22, %v6992_v21  ;;  %v6355_v33 = vsel %vm3520_vm5, %v6256_v3, %v3467_v63 }
 0x58b   :  { %v6358_v38 = vsel %vm3520_vm5, %v6259_v62, %v3471_v51  ;;  %v6419_v51 = vld [vmem:[%s6917_s1 + $0x8] sm:$0xff] }
 0x590   :  { %v2003_v56 = vpop.f32.mrb[12].mxu1 }
 0x591   :  { %v2010_v48 = vadd.f32 %v2003_v56, %v6984_v39  ;;  %v2005_v57 = vpop.f32.mrb[13].mxu1  ;;  %v7012_v56 = vld [vmem:[#allocation14_spill] sm:$0xff] }
 0x592   :  { %v2011_v29 = vadd.f32 %v2005_v57, %v5971_v42  ;;  %v7014_v57 = vld [vmem:[#allocation16_spill] sm:$0xff] }
 0x593   :  { %5341 = vtanh.f32 %v2010_v48  ;;  %v7013_v48 = vld [vmem:[#allocation15_spill] sm:$0xff] }
 0x594   :  { %5343 = vtanh.f32 %v2011_v29  ;;  %v7015_v29 = vld [vmem:[#allocation17_spill] sm:$0xff] }
 0x59d   :  { %v5342_v17 = vpop.eup %5341 }
 0x59e   :  { %v2017_v49 = vmul.f32 0.5, %v5342_v17  ;;  %v5344_v3 = vpop.eup %5343  ;;  %v7016_v17 = vld [vmem:[#allocation18_spill] sm:$0xff] }
 0x59f   :  { %v2018_v62 = vmul.f32 0.5, %v5344_v3 }
 0x5a0   :  { %v2020_v46 = vadd.f32 0.5, %v2017_v49  ;;  %v7017_v49 = vld [vmem:[#allocation19_spill] sm:$0xff] }
 0x5a1   :  { %v2021_v35 = vadd.f32 0.5, %v2018_v62 }
 0x5a2   :  { %v2022_v25 = vmul.f32 %v2020_v46, %v6264_v13  ;;  %v6374_v13 = vld [vmem:[%s6917_s1] sm:$0xff] }
 0x5a3   :  { %v7018_v46 = vld [vmem:[#allocation20_spill] sm:$0xff] }
 0x5a4   :  { %v6363_v59 = vadd.f32 %v2023_v6, %v2022_v25  ;;  %v3955_v6 = vld [vmem:[%s6916_s0 + $0xa] sm:$0x3] }
 0x5a6   :  { %5345 = vtanh.f32 %v6363_v59 }
 0x5b0   :  { %v5346_v22 = vpop.eup %5345 }
 0x5b1   :  { %v6366_v63 = vmul.f32 %v5346_v22, %v2021_v35 }
 0x5b3   :  { %4360 = vmatmul.mubr.f32.vlgmr.msra.gmra.mrb[14].mxu0 %v6366_v63  ;;  %2170 = vmatmul.mubr.f32.vlgmr.msra.gmra.mrb[14].mxu1 %v6366_v63 }
 0x5b4   :  { %4942 = vmatpush1.bf16.msra.mxu0 %v5607_v14  ;;  %3957 = vmatpush1.msk.msra.mxu1 %vm321_vm0, %v6374_v13 }
 0x5b5   :  { %4944 = vmatprep.subr.bf16.mxu0 %v5622_v19  ;;  %2314 = vmatprep.mubr.f32.mxu1 %v6980_v1 }
 0x5b6   :  { %2240 = vmatprep.mubr.f32.mxu0 %v6980_v1  ;;  %4971 = vmatprep.subr.bf16.mxu1 %v6981_v61 }
 0x5b8   :  { %4946 = vmatpush1.bf16.msra.mxu0 %v5647_v27 }
 0x5b9   :  { %4948 = vmatprep.subr.bf16.mxu0 %v5660_v32 }
 0x5bb   :  { %3958 = vmatmul.mubr.msk.f32.vlgmr.msra.gmra.mrb[14].mxu1 %vm317_vm1, %v3955_v6 }
 0x5bc   :  { %4950 = vmatpush1.bf16.msra.mxu0 %v5685_v40  ;;  %4973 = vmatpush3.bf16.msra.mxu1 %v5915_v60 }
 0x5bd   :  { %4952 = vmatprep.subr.bf16.mxu0 %v5699_v45  ;;  %4974 = vmatprep.subr.bf16.mxu1 %v6981_v61 }
 0x5be   :  { %4394 = vmatprep.mubr.msk.f32.mxu1 %vm5481_vm2, %v6980_v1 }
 0x5c0   :  { %4954 = vmatpush1.bf16.msra.mxu0 %v5724_v53  ;;  %4976 = vmatpush3.bf16.msra.mxu1 %v5920_v4 }
 0x5c1   :  { %4956 = vmatprep.subr.bf16.mxu0 %v5738_v58  ;;  %4977 = vmatprep.subr.bf16.mxu1 %v6981_v61 }
 0x5c4   :  { %4958 = vmatpush1.bf16.msra.mxu0 %v5760_v2  ;;  %4979 = vmatpush3.bf16.msra.mxu1 %v5924_v11 }
 0x5c5   :  { %4960 = vmatprep.subr.bf16.mxu0 %v5774_v8  ;;  %4980 = vmatprep.subr.bf16.mxu1 %v6981_v61 }
 0x5c8   :  { %4962 = vmatpush1.bf16.msra.mxu0 %v5796_v20  ;;  %4982 = vmatpush3.bf16.msra.mxu1 %v5928_v15 }
 0x5c9   :  { %4964 = vmatprep.subr.bf16.mxu0 %v5810_v26  ;;  %4983 = vmatprep.subr.bf16.mxu1 %v6981_v61 }
 0x5cc   :  { %4966 = vmatpush1.bf16.msra.mxu0 %v5832_v37  ;;  %4985 = vmatpush3.bf16.msra.mxu1 %v5932_v24 }
 0x5cd   :  { %4968 = vmatprep.subr.bf16.mxu0 %v5843_v43  ;;  %4986 = vmatprep.subr.bf16.mxu1 %v6981_v61 }
 0x5d0   :  { %4970 = vmatpush1.bf16.msra.mxu0 %v5866_v50  ;;  %4988 = vmatpush3.bf16.msra.mxu1 %v5936_v30 }
 0x5d1   :  { %3959 = vmatprep.subr.msk.mxu0 %vm321_vm0, %v5875_v55  ;;  %4989 = vmatprep.subr.bf16.mxu1 %v6981_v61 }
 0x5d3   :  { %2241 = vmatmul.mubr.f32.vlgmr.msra.gmra.mrb[16].mxu0 %v6366_v63 }
 0x5d4   :  { %3960 = vmatpush1.msk.msra.mxu0 %vm321_vm0, %v6419_v51  ;;  %2385 = vmatprep.mubr.f32.mxu0 %v6980_v1 }
 0x5d5   :  { %4996 = vmatprep.subr.bf16.mxu0 %v5582_v5  ;;  %4991 = vmatpush3.bf16.msra.mxu1 %v5940_v34 }
 0x5d6   :  { %4992 = vmatprep.subr.bf16.mxu1 %v6981_v61 }
 0x5d9   :  { %4994 = vmatpush3.bf16.msra.mxu1 %v5944_v44 }
 0x5da   :  { %5028 = vmatprep.subr.bf16.mxu1 %v5593_v9 }
 0x5db   :  { %3961 = vmatmul.mubr.msk.f32.vlgmr.msra.gmra.mrb[16].mxu0 %vm317_vm1, %v3955_v6  ;;  %v7019_v6 = vld [vmem:[#allocation24_spill] sm:$0xff] }
 0x5dc   :  { %4998 = vmatpush1.bf16.msra.mxu0 %v5595_v10  ;;  %2553 = vmatprep.mubr.f32.mxu0 %v6980_v1 }
 0x5dd   :  { %5000 = vmatprep.subr.bf16.mxu0 %v5620_v18 }
 0x5e0   :  { %5002 = vmatpush1.bf16.msra.mxu0 %v5634_v23 }
 0x5e1   :  { %5004 = vmatprep.subr.bf16.mxu0 %v5649_v28 }
 0x5e4   :  { %5006 = vmatpush1.bf16.msra.mxu0 %v5672_v36 }
 0x5e5   :  { %5008 = vmatprep.subr.bf16.mxu0 %v5687_v41 }
 0x5e8   :  { %5010 = vmatpush1.bf16.msra.mxu0 %v5720_v52 }
 0x5e9   :  { %5012 = vmatprep.subr.bf16.mxu0 %v5726_v54 }
 0x5ec   :  { %5014 = vmatpush1.bf16.msra.mxu0 %v7002_v47 }
 0x5ed   :  { %5016 = vmatprep.subr.bf16.mxu0 %v7012_v56 }
 0x5f0   :  { %5018 = vmatpush1.bf16.msra.mxu0 %v7013_v48 }
 0x5f1   :  { %5020 = vmatprep.subr.bf16.mxu0 %v7014_v57 }
 0x5f4   :  { %5022 = vmatpush1.bf16.msra.mxu0 %v7015_v29 }
 0x5f5   :  { %5024 = vmatprep.subr.bf16.mxu0 %v7016_v17 }
 0x5f8   :  { %5026 = vmatpush1.bf16.msra.mxu0 %v7017_v49 }
 0x5f9   :  { %3963 = vmatprep.subr.msk.mxu0 %vm321_vm0, %v7018_v46 }
 0x686   :  { %v2093_v25 = vpop.f32.mrb[14].mxu0 }
 0x687   :  { %v2094_v3 = vadd.f32 %v7010_v12, %v2093_v25  ;;  %v4361_v62 = vpop.f32.mrb[15].mxu0 }
 0x689   :  { %5347 = vtanh.f32 %v2094_v3 }
 0x68e   :  { %v2316_v35 = vpop.f32.mrb[14].mxu1 }
 0x68f   :  { %v2318_v22 = vpop.f32.mrb[15].mxu1  ;;  %v2392_v57 = vadd.f32 %v2316_v35, %v7000_v16 }
 0x690   :  { %v2393_v48 = vadd.f32 %v2318_v22, %v7019_v6 }
 0x692   :  { %5349 = vtanh.f32 %v2393_v48 }
 0x693   :  { %v5348_v29 = vpop.eup %5347  ;;  %5351 = vtanh.f32 %v2392_v57 }
 0x694   :  { %v2098_v56 = vmul.f32 1.442695, %v5348_v29 }
 0x696   :  { %5353 = vpow2.f32 %v2098_v56 }
 0x69c   :  { %v5350_v49 = vpop.eup %5349 }
 0x69d   :  { %v2400_v17 = vmul.f32 0.5, %v5350_v49  ;;  %v5352_v47 = vpop.eup %5351 }
 0x69f   :  { %v2403_v46 = vadd.f32 0.5, %v2400_v17 }
 0x6a0   :  { %v5354_v54 = vpop.eup %5353 }
 0x6a1   :  { %v3359_v25 = vrot.slane %v5354_v54, %v6142_v31  ;;  %v2407_v62 = vmul.f32 %v5352_v47, %v2403_v46  ;;  %v6453_v3 = vadd.f32 %v5354_v54, %v6344_v7  ;;  %v2101_v22 = vmul.f32 %v5354_v54, %v6366_v63 }
 0x6a3   :  { %v3360_v6 = vcombine.high %v3359_v25, %v3359_v25  ;;  %v3367_v48 = vrot.slane %v3359_v25, %v6142_v31  ;;  %v6458_v29 = vadd.f32 %v2101_v22, %v6349_v0 }
 0x6a5   :  { %v3374_v56 = vrot.slane %v3360_v6, %v6142_v31  ;;  %v3477_v57 = vrot.slane %v3367_v48, %v6992_v21 }
 0x6a7   :  { %v3481_v17 = vrot.slane %v3374_v56, %v6992_v21  ;;  %v6465_v47 = vsel %vm321_vm0, %v6355_v33, %v3477_v57 }
 0x6a9   :  { %v6469_v7 = vsel %vm321_vm0, %v6358_v38, %v3481_v17  ;;  %v7024_v17 = vld [vmem:[#allocation16_spill] sm:$0xff] }
 0x6ae   :  { %v2387_v54 = vpop.f32.mrb[16].mxu0 }
 0x6af   :  { %v2394_v63 = vadd.f32 %v2387_v54, %v6984_v39  ;;  %v2389_v49 = vpop.f32.mrb[17].mxu0 }
 0x6b0   :  { %v2395_v0 = vadd.f32 %v2389_v49, %v5971_v42 }
 0x6b1   :  { %5355 = vtanh.f32 %v2394_v63 }
 0x6b2   :  { %5357 = vtanh.f32 %v2395_v0  ;;  %v7029_v0 = vld [vmem:[#allocation24_spill] sm:$0xff] }
 0x6bb   :  { %v5356_v46 = vpop.eup %5355 }
 0x6bc   :  { %v2401_v35 = vmul.f32 0.5, %v5356_v46  ;;  %v5358_v33 = vpop.eup %5357 }
 0x6bd   :  { %v2402_v38 = vmul.f32 0.5, %v5358_v33 }
 0x6be   :  { %v2404_v6 = vadd.f32 0.5, %v2401_v35 }
 0x6bf   :  { %v2405_v48 = vadd.f32 0.5, %v2402_v38 }
 0x6c0   :  { %v2406_v25 = vmul.f32 %v2404_v6, %v6363_v59  ;;  %v3962_v59 = vld [vmem:[%s6916_s0 + $0xc] sm:$0x3] }
 0x6c2   :  { %v6474_v22 = vadd.f32 %v2407_v62, %v2406_v25  ;;  %v7022_v62 = vld [vmem:[#allocation14_spill] sm:$0xff] }
 0x6c4   :  { %5359 = vtanh.f32 %v6474_v22 }
 0x6ce   :  { %v5360_v56 = vpop.eup %5359 }
 0x6cf   :  { %v6477_v57 = vmul.f32 %v5360_v56, %v2405_v48 }
 0x6d1   :  { %4395 = vmatmul.mubr.f32.vlgmr.msra.gmra.mrb[16].mxu1 %v6477_v57  ;;  %2554 = vmatmul.mubr.f32.vlgmr.msra.gmra.mrb[18].mxu0 %v6477_v57 }
 0x6d2   :  { %5030 = vmatpush1.bf16.msra.mxu1 %v5607_v14  ;;  %3964 = vmatpush1.msk.msra.mxu0 %vm321_vm0, %v6374_v13 }
 0x6d3   :  { %5032 = vmatprep.subr.bf16.mxu1 %v5622_v19  ;;  %2698 = vmatprep.mubr.f32.mxu0 %v6980_v1 }
 0x6d4   :  { %2624 = vmatprep.mubr.f32.mxu1 %v6980_v1  ;;  %5059 = vmatprep.subr.bf16.mxu0 %v6981_v61 }
 0x6d6   :  { %5034 = vmatpush1.bf16.msra.mxu1 %v5647_v27 }
 0x6d7   :  { %5036 = vmatprep.subr.bf16.mxu1 %v5660_v32 }
 0x6d9   :  { %3965 = vmatmul.mubr.msk.f32.vlgmr.msra.gmra.mrb[18].mxu0 %vm317_vm1, %v3962_v59 }
 0x6da   :  { %5038 = vmatpush1.bf16.msra.mxu1 %v5685_v40  ;;  %5061 = vmatpush3.bf16.msra.mxu0 %v5915_v60 }
 0x6db   :  { %5040 = vmatprep.subr.bf16.mxu1 %v5699_v45  ;;  %5062 = vmatprep.subr.bf16.mxu0 %v6981_v61 }
 0x6dc   :  { %4429 = vmatprep.mubr.msk.f32.mxu0 %vm5481_vm2, %v6980_v1 }
 0x6de   :  { %5042 = vmatpush1.bf16.msra.mxu1 %v5724_v53  ;;  %5064 = vmatpush3.bf16.msra.mxu0 %v5920_v4 }
 0x6df   :  { %5044 = vmatprep.subr.bf16.mxu1 %v5738_v58  ;;  %5065 = vmatprep.subr.bf16.mxu0 %v6981_v61 }
 0x6e2   :  { %5046 = vmatpush1.bf16.msra.mxu1 %v5760_v2  ;;  %5067 = vmatpush3.bf16.msra.mxu0 %v5924_v11 }
 0x6e3   :  { %5048 = vmatprep.subr.bf16.mxu1 %v5774_v8  ;;  %5068 = vmatprep.subr.bf16.mxu0 %v6981_v61 }
 0x6e6   :  { %5050 = vmatpush1.bf16.msra.mxu1 %v5796_v20  ;;  %5070 = vmatpush3.bf16.msra.mxu0 %v5928_v15 }
 0x6e7   :  { %5052 = vmatprep.subr.bf16.mxu1 %v5810_v26  ;;  %5071 = vmatprep.subr.bf16.mxu0 %v6981_v61 }
 0x6ea   :  { %5054 = vmatpush1.bf16.msra.mxu1 %v5832_v37  ;;  %5073 = vmatpush3.bf16.msra.mxu0 %v5932_v24 }
 0x6eb   :  { %5056 = vmatprep.subr.bf16.mxu1 %v5843_v43  ;;  %5074 = vmatprep.subr.bf16.mxu0 %v6981_v61 }
 0x6ee   :  { %5058 = vmatpush1.bf16.msra.mxu1 %v5866_v50  ;;  %5076 = vmatpush3.bf16.msra.mxu0 %v5936_v30 }
 0x6ef   :  { %3966 = vmatprep.subr.msk.mxu1 %vm321_vm0, %v5875_v55  ;;  %5077 = vmatprep.subr.bf16.mxu0 %v6981_v61 }
 0x6f1   :  { %2625 = vmatmul.mubr.f32.vlgmr.msra.gmra.mrb[18].mxu1 %v6477_v57 }
 0x6f2   :  { %3967 = vmatpush1.msk.msra.mxu1 %vm321_vm0, %v6419_v51  ;;  %2769 = vmatprep.mubr.f32.mxu1 %v6980_v1 }
 0x6f3   :  { %5084 = vmatprep.subr.bf16.mxu1 %v5582_v5  ;;  %5079 = vmatpush3.bf16.msra.mxu0 %v5940_v34  ;;  %v7020_v5 = vld [vmem:[#allocation12_spill] sm:$0xff] }
 0x6f4   :  { %5080 = vmatprep.subr.bf16.mxu0 %v6981_v61 }
 0x6f7   :  { %5082 = vmatpush3.bf16.msra.mxu0 %v5944_v44 }
 0x6f8   :  { %5116 = vmatprep.subr.bf16.mxu0 %v5593_v9  ;;  %v7021_v9 = vld [vmem:[#allocation13_spill] sm:$0xff] }
 0x6f9   :  { %3968 = vmatmul.mubr.msk.f32.vlgmr.msra.gmra.mrb[18].mxu1 %vm317_vm1, %v3962_v59 }
 0x6fa   :  { %5086 = vmatpush1.bf16.msra.mxu1 %v5595_v10  ;;  %2937 = vmatprep.mubr.f32.mxu1 %v6980_v1  ;;  %v7023_v10 = vld [vmem:[#allocation15_spill] sm:$0xff] }
 0x6fb   :  { %5088 = vmatprep.subr.bf16.mxu1 %v5620_v18  ;;  %v7025_v18 = vld [vmem:[#allocation17_spill] sm:$0xff] }
 0x6fe   :  { %5090 = vmatpush1.bf16.msra.mxu1 %v5634_v23  ;;  %v7026_v23 = vld [vmem:[#allocation18_spill] sm:$0xff] }
 0x6ff   :  { %5092 = vmatprep.subr.bf16.mxu1 %v5649_v28  ;;  %v7027_v28 = vld [vmem:[#allocation19_spill] sm:$0xff] }
 0x702   :  { %5094 = vmatpush1.bf16.msra.mxu1 %v5672_v36  ;;  %v7028_v36 = vld [vmem:[#allocation20_spill] sm:$0xff] }
 0x703   :  { %5096 = vmatprep.subr.bf16.mxu1 %v5687_v41 }
 0x706   :  { %5098 = vmatpush1.bf16.msra.mxu1 %v5720_v52 }
 0x707   :  { %5100 = vmatprep.subr.bf16.mxu1 %v7020_v5 }
 0x70a   :  { %5102 = vmatpush1.bf16.msra.mxu1 %v7021_v9 }
 0x70b   :  { %5104 = vmatprep.subr.bf16.mxu1 %v7022_v62 }
 0x70e   :  { %5106 = vmatpush1.bf16.msra.mxu1 %v7023_v10 }
 0x70f   :  { %5108 = vmatprep.subr.bf16.mxu1 %v7024_v17 }
 0x712   :  { %5110 = vmatpush1.bf16.msra.mxu1 %v7025_v18 }
 0x713   :  { %5112 = vmatprep.subr.bf16.mxu1 %v7026_v23 }
 0x716   :  { %5114 = vmatpush1.bf16.msra.mxu1 %v7027_v28 }
 0x717   :  { %3970 = vmatprep.subr.msk.mxu1 %vm321_vm0, %v7028_v36 }
 0x7a4   :  { %v2477_v41 = vpop.f32.mrb[16].mxu1 }
 0x7a5   :  { %v2478_v52 = vadd.f32 %v7010_v12, %v2477_v41  ;;  %v4396_v54 = vpop.f32.mrb[17].mxu1 }
 0x7a7   :  { %5361 = vtanh.f32 %v2478_v52 }
 0x7ac   :  { %v2700_v63 = vpop.f32.mrb[18].mxu0 }
 0x7ad   :  { %v2702_v49 = vpop.f32.mrb[19].mxu0  ;;  %v2776_v35 = vadd.f32 %v2700_v63, %v7000_v16 }
 0x7ae   :  { %v2777_v46 = vadd.f32 %v2702_v49, %v7029_v0 }
 0x7b0   :  { %5363 = vtanh.f32 %v2777_v46 }
 0x7b1   :  { %v5362_v6 = vpop.eup %5361  ;;  %5365 = vtanh.f32 %v2776_v35 }
 0x7b2   :  { %v2482_v25 = vmul.f32 1.442695, %v5362_v6 }
 0x7b4   :  { %5367 = vpow2.f32 %v2482_v25 }
 0x7ba   :  { %v5364_v33 = vpop.eup %5363 }
 0x7bb   :  { %v2784_v38 = vmul.f32 0.5, %v5364_v33  ;;  %v5366_v48 = vpop.eup %5365 }
 0x7bd   :  { %v2787_v56 = vadd.f32 0.5, %v2784_v38 }
 0x7be   :  { %v5368_v59 = vpop.eup %5367 }
 0x7bf   :  { %v3382_v12 = vrot.slane %v5368_v59, %v6142_v31  ;;  %v2791_v5 = vmul.f32 %v5366_v48, %v2787_v56  ;;  %v6554_v9 = vadd.f32 %v5368_v59, %v6453_v3  ;;  %v2485_v62 = vmul.f32 %v5368_v59, %v6477_v57 }
 0x7c1   :  { %v3383_v10 = vcombine.high %v3382_v12, %v3382_v12  ;;  %v3390_v17 = vrot.slane %v3382_v12, %v6142_v31  ;;  %v6559_v18 = vadd.f32 %v2485_v62, %v6458_v29 }
 0x7c3   :  { %v3397_v23 = vrot.slane %v3383_v10, %v6142_v31  ;;  %v3487_v28 = vrot.slane %v3390_v17, %v6992_v21 }
 0x7c5   :  { %v3491_v36 = vrot.slane %v3397_v23, %v6992_v21  ;;  %v6565_v41 = vsel %vm3525_vm6, %v6465_v47, %v3487_v28 }
 0x7c7   :  { %v6568_v3 = vsel %vm3525_vm6, %v6469_v7, %v3491_v36 }
 0x7cc   :  { %v2771_v57 = vpop.f32.mrb[18].mxu1 }
 0x7cd   :  { %v2778_v52 = vadd.f32 %v2771_v57, %v6984_v39  ;;  %v2773_v54 = vpop.f32.mrb[19].mxu1 }
 0x7ce   :  { %v2779_v29 = vadd.f32 %v2773_v54, %v5971_v42 }
 0x7cf   :  { %5369 = vtanh.f32 %v2778_v52  ;;  %v3590_v52 = vld [vmem:[%s6922_s6 + $0x98] sm:$0xff] }
 0x7d0   :  { %5371 = vtanh.f32 %v2779_v29  ;;  %v3573_v29 = vld [vmem:[%s6922_s6 + $0x10] sm:$0xff] }
 0x7d9   :  { %v5370_v63 = vpop.eup %5369 }
 0x7da   :  { %v2785_v49 = vmul.f32 0.5, %v5370_v63  ;;  %v5372_v47 = vpop.eup %5371  ;;  %v3574_v63 = vld [vmem:[%s6922_s6 + $0x18] sm:$0xff] }
 0x7db   :  { %v2786_v7 = vmul.f32 0.5, %v5372_v47  ;;  %v3575_v47 = vld [vmem:[%s6922_s6 + $0x20] sm:$0xff] }
 0x7dc   :  { %v2788_v46 = vadd.f32 0.5, %v2785_v49  ;;  %v5177_v49 = vpack.c.bf16 %v3574_v63, %v3573_v29 }
 0x7dd   :  { %v2789_v25 = vadd.f32 0.5, %v2786_v7  ;;  %v3576_v7 = vld [vmem:[%s6922_s6 + $0x28] sm:$0xff] }
 0x7de   :  { %v2790_v35 = vmul.f32 %v2788_v46, %v6474_v22  ;;  %v3969_v22 = vld [vmem:[%s6916_s0 + $0xe] sm:$0x3]  ;;  %v3591_v46 = vld [vmem:[%s6922_s6 + $0xa0] sm:$0xff] }
 0x7e0   :  { %v6573_v6 = vadd.f32 %v2791_v5, %v2790_v35  ;;  %v3592_v35 = vld [vmem:[%s6922_s6 + $0xa8] sm:$0xff] }
 0x7e2   :  { %5373 = vtanh.f32 %v6573_v6 }
 0x7ec   :  { %v5374_v33 = vpop.eup %5373 }
 0x7ed   :  { %v6576_v38 = vmul.f32 %v5374_v33, %v2789_v25  ;;  %v5181_v25 = vpack.c.bf16 %v3576_v7, %v3575_v47  ;;  %v3593_v33 = vld [vmem:[%s6922_s6 + $0xb0] sm:$0xff] }
 0x7ef   :  { %4430 = vmatmul.mubr.f32.vlgmr.msra.gmra.mrb[20].mxu0 %v6576_v38  ;;  %2938 = vmatmul.mubr.f32.vlgmr.msra.gmra.mrb[20].mxu1 %v6576_v38 }
 0x7f0   :  { %5118 = vmatpush1.bf16.msra.mxu0 %v5607_v14  ;;  %3971 = vmatpush1.msk.msra.mxu1 %vm321_vm0, %v6374_v13 }
 0x7f1   :  { %5120 = vmatprep.subr.bf16.mxu0 %v5622_v19  ;;  %3082 = vmatprep.mubr.f32.mxu1 %v6980_v1  ;;  %v6631_v19 = vld [vmem:[%s6921_s5] ss:$0 sm:$0xff] }
 0x7f2   :  { %3008 = vmatprep.mubr.f32.mxu0 %v6980_v1  ;;  %5147 = vmatprep.subr.bf16.mxu1 %v6981_v61 }
 0x7f4   :  { %5122 = vmatpush1.bf16.msra.mxu0 %v5647_v27 }
 0x7f5   :  { %5124 = vmatprep.subr.bf16.mxu0 %v5660_v32 }
 0x7f7   :  { %3972 = vmatmul.mubr.msk.f32.vlgmr.msra.gmra.mrb[20].mxu1 %vm317_vm1, %v3969_v22 }
 0x7f8   :  { %5126 = vmatpush1.bf16.msra.mxu0 %v5685_v40  ;;  %5149 = vmatpush3.bf16.msra.mxu1 %v5915_v60 }
 0x7f9   :  { %5128 = vmatprep.subr.bf16.mxu0 %v5699_v45  ;;  %5150 = vmatprep.subr.bf16.mxu1 %v6981_v61 }
 0x7fa   :  { %4464 = vmatprep.mubr.msk.f32.mxu1 %vm5481_vm2, %v6980_v1 }
 0x7fc   :  { %5130 = vmatpush1.bf16.msra.mxu0 %v5724_v53  ;;  %5152 = vmatpush3.bf16.msra.mxu1 %v5920_v4 }
 0x7fd   :  { %5132 = vmatprep.subr.bf16.mxu0 %v5738_v58  ;;  %5153 = vmatprep.subr.bf16.mxu1 %v6981_v61 }
 0x800   :  { %5134 = vmatpush1.bf16.msra.mxu0 %v5760_v2  ;;  %5155 = vmatpush3.bf16.msra.mxu1 %v5924_v11 }
 0x801   :  { %5136 = vmatprep.subr.bf16.mxu0 %v5774_v8  ;;  %5156 = vmatprep.subr.bf16.mxu1 %v6981_v61 }
 0x804   :  { %5138 = vmatpush1.bf16.msra.mxu0 %v5796_v20  ;;  %5158 = vmatpush3.bf16.msra.mxu1 %v5928_v15 }
 0x805   :  { %5140 = vmatprep.subr.bf16.mxu0 %v5810_v26  ;;  %5159 = vmatprep.subr.bf16.mxu1 %v6981_v61 }
 0x808   :  { %5142 = vmatpush1.bf16.msra.mxu0 %v5832_v37  ;;  %5161 = vmatpush3.bf16.msra.mxu1 %v5932_v24 }
 0x809   :  { %5144 = vmatprep.subr.bf16.mxu0 %v5843_v43  ;;  %5162 = vmatprep.subr.bf16.mxu1 %v6981_v61 }
 0x80c   :  { %5146 = vmatpush1.bf16.msra.mxu0 %v5866_v50  ;;  %5164 = vmatpush3.bf16.msra.mxu1 %v5936_v30 }
 0x80d   :  { %3973 = vmatprep.subr.msk.mxu0 %vm321_vm0, %v5875_v55  ;;  %5165 = vmatprep.subr.bf16.mxu1 %v6981_v61 }
 0x80f   :  { %3009 = vmatmul.mubr.f32.vlgmr.msra.gmra.mrb[22].mxu0 %v6576_v38 }
 0x810   :  { %3974 = vmatpush1.msk.msra.mxu0 %vm321_vm0, %v6419_v51  ;;  %3153 = vmatprep.mubr.f32.mxu0 %v6980_v1 }
 0x811   :  { %5167 = vmatpush3.bf16.msra.mxu1 %v5940_v34 }
 0x812   :  { %5168 = vmatprep.subr.bf16.mxu1 %v6981_v61 }
 0x815   :  { %5170 = vmatpush3.bf16.msra.mxu1 %v5944_v44 }
 0x817   :  { %3975 = vmatmul.mubr.msk.f32.vlgmr.msra.gmra.mrb[22].mxu0 %vm317_vm1, %v3969_v22 }
 0x8c2   :  { %v2861_v14 = vpop.f32.mrb[20].mxu0 }
 0x8c3   :  { %v2862_v27 = vadd.f32 %v6631_v19, %v2861_v14  ;;  %v4431_v32 = vpop.f32.mrb[21].mxu0  ;;  %v3577_v14 = vld [vmem:[%s6922_s6 + $0x30] sm:$0xff] }
 0x8c5   :  { %5375 = vtanh.f32 %v2862_v27  ;;  %v3578_v27 = vld [vmem:[%s6922_s6 + $0x38] sm:$0xff] }
 0x8c6   :  { %v5185_v32 = vpack.c.bf16 %v3578_v27, %v3577_v14 }
 0x8ca   :  { %v3084_v40 = vpop.f32.mrb[20].mxu1 }
 0x8cb   :  { %v3086_v45 = vpop.f32.mrb[21].mxu1  ;;  %v3160_v58 = vadd.f32 %v3084_v40, %v7000_v16  ;;  %v3595_v40 = vld [vmem:[%s6922_s6 + $0xc0] sm:$0xff] }
 0x8cc   :  { %v3161_v53 = vadd.f32 %v3086_v45, %v7029_v0  ;;  %v3596_v45 = vld [vmem:[%s6922_s6 + $0xc8] sm:$0xff] }
 0x8ce   :  { %5377 = vtanh.f32 %v3161_v53  ;;  %v5187_v53 = vpack.c.bf16 %v3596_v45, %v3595_v40  ;;  %v3792_v45 = vld [vmem:[%s6924_s8 + $0x80] sm:$0xff] }
 0x8cf   :  { %v5376_v2 = vpop.eup %5375  ;;  %5379 = vtanh.f32 %v3160_v58  ;;  %v3579_v58 = vld [vmem:[%s6922_s6 + $0x40] sm:$0xff] }
 0x8d0   :  { %v2866_v8 = vmul.f32 1.442695, %v5376_v2  ;;  %v3580_v2 = vld [vmem:[%s6922_s6 + $0x48] sm:$0xff] }
 0x8d2   :  { %5381 = vpow2.f32 %v2866_v8  ;;  %v5189_v8 = vpack.c.bf16 %v3580_v2, %v3579_v58 }
 0x8d8   :  { %v5378_v20 = vpop.eup %5377 }
 0x8d9   :  { %v3168_v26 = vmul.f32 0.5, %v5378_v20  ;;  %v5380_v37 = vpop.eup %5379  ;;  %v3597_v20 = vld [vmem:[%s6922_s6 + $0xd0] sm:$0xff] }
 0x8db   :  { %v3171_v43 = vadd.f32 0.5, %v3168_v26  ;;  %v3598_v26 = vld [vmem:[%s6922_s6 + $0xd8] sm:$0xff] }
 0x8dc   :  { %v5382_v50 = vpop.eup %5381 }
 0x8dd   :  { %v3405_v55 = vrot.slane %v5382_v50, %v6142_v31  ;;  %v3175_v60 = vmul.f32 %v5380_v37, %v3171_v43  ;;  %v6638_v4 = vadd.f32 %v5382_v50, %v6554_v9  ;;  %v2869_v11 = vmul.f32 %v5382_v50, %v6576_v38  ;;  %v3594_v38 = vld [vmem:[%s6922_s6 + $0xb8] sm:$0xff]  ;;  %v3581_v43 = vld [vmem:[%s6922_s6 + $0x50] sm:$0xff] }
 0x8de   :  { %v5183_v22 = vpack.c.bf16 %v3594_v38, %v3593_v33  ;;  %v5191_v37 = vpack.c.bf16 %v3598_v26, %v3597_v20  ;;  %v3582_v50 = vld [vmem:[%s6922_s6 + $0x58] sm:$0xff]  ;;  %v3777_v20 = vld [vmem:[%s6924_s8 + $0x8] sm:$0xff]  ;;  %v3794_v26 = vld [vmem:[%s6924_s8 + $0x90] sm:$0xff] }
 0x8df   :  { %v3406_v15 = vcombine.high %v3405_v55, %v3405_v55  ;;  %v3413_v24 = vrot.slane %v3405_v55, %v6142_v31  ;;  %v6643_v30 = vadd.f32 %v2869_v11, %v6559_v18  ;;  %v5193_v55 = vpack.c.bf16 %v3582_v50, %v3581_v43  ;;  %v3600_v11 = vld [vmem:[%s6922_s6 + $0xe8] sm:$0xff] }
 0x8e1   :  { %v3420_v34 = vrot.slane %v3406_v15, %v6142_v31  ;;  %v3497_v44 = vrot.slane %v3413_v24, %v6992_v21  ;;  %v3583_v24 = vld [vmem:[%s6922_s6 + $0x60] sm:$0xff] }
 0x8e3   :  { %v3501_v61 = vrot.slane %v3420_v34, %v6992_v21  ;;  %v6649_v16 = vsel %vm3528_vm7, %v6565_v41, %v3497_v44  ;;  %v3571_v41 = vld [vmem:[%s6922_s6] sm:$0xff]  ;;  %v3584_v34 = vld [vmem:[%s6922_s6 + $0x68] sm:$0xff] }
 0x8e4   :  { %v5197_v44 = vpack.c.bf16 %v3584_v34, %v3583_v24  ;;  %v3796_v24 = vld [vmem:[%s6924_s8 + $0xa0] sm:$0xff]  ;;  %v3797_v34 = vld [vmem:[%s6924_s8 + $0xa8] sm:$0xff] }
 0x8e5   :  { %v6652_v13 = vsel %vm3528_vm7, %v6568_v3, %v3501_v61  ;;  %v3572_v3 = vld [vmem:[%s6922_s6 + $0x8] sm:$0xff]  ;;  %v3601_v61 = vld [vmem:[%s6922_s6 + $0xf0] sm:$0xff] }
 0x8e6   :  { %v5173_v57 = vpack.c.bf16 %v3572_v3, %v3571_v41 }
 0x8ea   :  { %v3155_v51 = vpop.f32.mrb[22].mxu0 }
 0x8eb   :  { %v3162_v0 = vadd.f32 %v3155_v51, %v6984_v39  ;;  %v3157_v48 = vpop.f32.mrb[23].mxu0  ;;  %v3588_v39 = vld [vmem:[%s6922_s6 + $0x88] sm:$0xff]  ;;  %v3602_v51 = vld [vmem:[%s6922_s6 + $0xf8] sm:$0xff] }
 0x8ec   :  { %v3163_v56 = vadd.f32 %v3157_v48, %v5971_v42  ;;  %v3587_v42 = vld [vmem:[%s6922_s6 + $0x80] sm:$0xff]  ;;  %v5199_v48 = vpack.c.bf16 %v3602_v51, %v3601_v61  ;;  %v5211_v61 = vpack.c.bf16 %v3797_v34, %v3796_v24 }
 0x8ed   :  { %5383 = vtanh.f32 %v3162_v0  ;;  %v5171_v36 = vpack.c.bf16 %v3588_v39, %v3587_v42  ;;  %v3585_v0 = vld [vmem:[%s6922_s6 + $0x70] sm:$0xff]  ;;  %v3780_v51 = vld [vmem:[%s6924_s8 + $0x20] sm:$0xff] }
 0x8ee   :  { %5385 = vtanh.f32 %v3163_v56  ;;  %v3586_v56 = vld [vmem:[%s6922_s6 + $0x78] sm:$0xff] }
 0x8ef   :  { %5172 = vmatprep.subr.bf16.mxu0 %v5171_v36 }
 0x8f0   :  { %5174 = vmatpush3.bf16.msra.mxu0 %v5173_v57 }
 0x8f7   :  { %v5384_v59 = vpop.eup %5383 }
 0x8f8   :  { %v3169_v12 = vmul.f32 0.5, %v5384_v59  ;;  %v5386_v10 = vpop.eup %5385  ;;  %v5201_v59 = vpack.c.bf16 %v3586_v56, %v3585_v0  ;;  %v3781_v0 = vld [vmem:[%s6924_s8 + $0x28] sm:$0xff]  ;;  %v3799_v56 = vld [vmem:[%s6924_s8 + $0xb8] sm:$0xff] }
 0x8f9   :  { %v3170_v17 = vmul.f32 0.5, %v5386_v10 }
 0x8fa   :  { %v3172_v5 = vadd.f32 0.5, %v3169_v12  ;;  %v3976_v12 = vld [vmem:[#allocation2] ss:$0 sm:$0xff] }
 0x8fb   :  { %v3173_v18 = vadd.f32 0.5, %v3170_v17 }
 0x8fc   :  { %v3174_v9 = vmul.f32 %v3172_v5, %v6573_v6  ;;  %v5179_v6 = vpack.c.bf16 %v3592_v35, %v3591_v46  ;;  %v5483_v5 = vmov 0  }
 0x8fd   :  { %5277 = vset.pattern.permute.xlu0 %v5483_v5  ;;  %v3782_v5 = vld [vmem:[%s6924_s8 + $0x30] sm:$0xff] }
 0x8fe   :  { %v3176_v62 = vadd.f32 %v3175_v60, %v3174_v9  ;;  %v3599_v60 = vld [vmem:[%s6922_s6 + $0xe0] sm:$0xff]  ;;  %3610 = vperm.xlu0 %5277, %v3976_v12  }
 0x8ff   :  { %v5195_v15 = vpack.c.bf16 %v3600_v11, %v3599_v60  ;;  %v3778_v11 = vld [vmem:[%s6924_s8 + $0x10] sm:$0xff] }
 0x900   :  { %5387 = vtanh.f32 %v3176_v62 }
 0x90a   :  { %v5388_v23 = vpop.eup %5387 }
 0x90b   :  { %v6657_v28 = vmul.f32 %v5388_v23, %v3173_v18 }
 0x90d   :  { %4465 = vmatmul.mubr.f32.vlgmr.msra.gmra.mrb[22].mxu1 %v6657_v28  ;;  %3677 = vmatprep.mubr.f32.mxu0 %v6657_v28 }
 0x90e   :  { %3767 = vmatprep.mubr.f32.mxu1 %v6980_v1  ;;  %v3589_v1 = vld [vmem:[%s6922_s6 + $0x90] sm:$0xff] }
 0x90f   :  { %v5175_v54 = vpack.c.bf16 %v3590_v52, %v3589_v1 }
 0x911   :  { %5176 = vmatprep.subr.bf16.mxu0 %v5175_v54 }
 0x912   :  { %5178 = vmatpush3.bf16.msra.mxu0 %v5177_v49 }
 0x913   :  { %5180 = vmatprep.subr.bf16.mxu0 %v5179_v6 }
 0x916   :  { %5182 = vmatpush3.bf16.msra.mxu0 %v5181_v25 }
 0x917   :  { %5184 = vmatprep.subr.bf16.mxu0 %v5183_v22 }
 0x91a   :  { %5186 = vmatpush3.bf16.msra.mxu0 %v5185_v32  ;;  %v3693_v32 = vld [vmem:[%s6926_s10] sm:$0xff] }
 0x91b   :  { %5188 = vmatprep.subr.bf16.mxu0 %v5187_v53  ;;  %v3695_v40 = vcombine.high %v3693_v32, %v3693_v32  ;;  %v3793_v53 = vld [vmem:[%s6924_s8 + $0x88] sm:$0xff] }
 0x91c   :  { %v5203_v58 = vpack.c.bf16 %v3793_v53, %v3792_v45 }
 0x91d   :  { %3977 = vmatprep.subr.msk.mxu1 %vm321_vm0, %v3695_v40 }
 0x91e   :  { %5190 = vmatpush3.bf16.msra.mxu0 %v5189_v8  ;;  %3978 = vmatpush1.msk.msra.mxu1 %vm321_vm0, %v3693_v32  ;;  %v3776_v8 = vld [vmem:[%s6924_s8] sm:$0xff] }
 0x91f   :  { %5192 = vmatprep.subr.bf16.mxu0 %v5191_v37  ;;  %5204 = vmatprep.subr.bf16.mxu1 %v5203_v58  ;;  %v3795_v37 = vld [vmem:[%s6924_s8 + $0x98] sm:$0xff]  ;;  %v5205_v50 = vpack.c.bf16 %v3777_v20, %v3776_v8 }
 0x920   :  { %v5207_v60 = vpack.c.bf16 %v3795_v37, %v3794_v26 }
 0x922   :  { %5194 = vmatpush3.bf16.msra.mxu0 %v5193_v55 }
 0x923   :  { %5196 = vmatprep.subr.bf16.mxu0 %v5195_v15  ;;  %v3779_v15 = vld [vmem:[%s6924_s8 + $0x18] sm:$0xff] }
 0x926   :  { %5198 = vmatpush3.bf16.msra.mxu0 %v5197_v44  ;;  %v5209_v44 = vpack.c.bf16 %v3779_v15, %v3778_v11 }
 0x927   :  { %5200 = vmatprep.subr.bf16.mxu0 %v5199_v48  ;;  %v3798_v48 = vld [vmem:[%s6924_s8 + $0xb0] sm:$0xff] }
 0x928   :  { %v5215_v12 = vpack.c.bf16 %v3799_v56, %v3798_v48 }
 0x92a   :  { %5202 = vmatpush3.bf16.msra.mxu0 %v5201_v59  ;;  %v5213_v59 = vpack.c.bf16 %v3781_v0, %v3780_v51 }
 0x97d   :  { %v3611_v33 = vpop.permute.xlu0 %3610 }
 0x9e0   :  { %v3245_v9 = vpop.f32.mrb[22].mxu1 }
 0x9e1   :  { %v3246_v62 = vadd.f32 %v6631_v19, %v3245_v9  ;;  %v4466_v10 = vpop.f32.mrb[23].mxu1  ;;  %v3783_v9 = vld [vmem:[%s6924_s8 + $0x38] sm:$0xff] }
 0x9e2   :  { %v3801_v10 = vld [vmem:[%s6924_s8 + $0xc8] sm:$0xff] }
 0x9e3   :  { %5389 = vtanh.f32 %v3246_v62  ;;  %v3800_v62 = vld [vmem:[%s6924_s8 + $0xc0] sm:$0xff] }
 0x9ed   :  { %v5390_v17 = vpop.eup %5389 }
 0x9ee   :  { %v3250_v18 = vmul.f32 1.442695, %v5390_v17  ;;  %v5217_v17 = vpack.c.bf16 %v3783_v9, %v3782_v5 }
 0x9f0   :  { %5391 = vpow2.f32 %v3250_v18  ;;  %v5219_v18 = vpack.c.bf16 %v3801_v10, %v3800_v62 }
 0x9fa   :  { %v5392_v23 = vpop.eup %5391 }
 0x9fb   :  { %v3428_v42 = vrot.slane %v5392_v23, %v6142_v31  ;;  %v3252_v39 = vadd.f32 %v5392_v23, %v6638_v4  ;;  %v3253_v36 = vmul.f32 %v5392_v23, %v6657_v28  ;;  %v3784_v23 = vld [vmem:[%s6924_s8 + $0x40] sm:$0xff] }
 0x9fd   :  { %v3429_v41 = vcombine.high %v3428_v42, %v3428_v42  ;;  %v3436_v3 = vrot.slane %v3428_v42, %v6142_v31  ;;  %v3254_v57 = vadd.f32 %v3253_v36, %v6643_v30  ;;  %5393 = vrcp.f32 %v3252_v39  ;;  %v3785_v42 = vld [vmem:[%s6924_s8 + $0x48] sm:$0xff]  ;;  %v3802_v39 = vld [vmem:[%s6924_s8 + $0xd0] sm:$0xff]  ;;  %v3803_v36 = vld [vmem:[%s6924_s8 + $0xd8] sm:$0xff] }
 0x9ff   :  { %v3443_v19 = vrot.slane %v3429_v41, %v6142_v31  ;;  %v3507_v1 = vrot.slane %v3436_v3, %v6992_v21  ;;  %v5221_v41 = vpack.c.bf16 %v3785_v42, %v3784_v23  ;;  %v5223_v3 = vpack.c.bf16 %v3803_v36, %v3802_v39 }
 0xa01   :  { %v3511_v52 = vrot.slane %v3443_v19, %v6992_v21  ;;  %v3532_v54 = vsel %vm3531_vm8, %v6649_v16, %v3507_v1  ;;  %v3787_v19 = vld [vmem:[%s6924_s8 + $0x58] sm:$0xff]  ;;  %v3804_v1 = vld [vmem:[%s6924_s8 + $0xe0] sm:$0xff] }
 0xa03   :  { %v3533_v29 = vsel %vm3531_vm8, %v6652_v13, %v3511_v52  ;;  %v3805_v52 = vld [vmem:[%s6924_s8 + $0xe8] sm:$0xff] }
 0xa07   :  { %v5394_v4 = vpop.eup %5393 }
 0xa08   :  { %v6769_v63 = vmul.f32 %v5394_v4, %v3254_v57  ;;  %v3541_v49 = vrot.slane %v5394_v4, %v6142_v31  ;;  %v3786_v57 = vld [vmem:[%s6924_s8 + $0x50] sm:$0xff]  ;;  %v3788_v4 = vld [vmem:[%s6924_s8 + $0x60] sm:$0xff] }
 0xa0a   :  { %v3542_v46 = vcombine.high %v3541_v49, %v3541_v49  ;;  %v3549_v30 = vrot.slane %v3541_v49, %v6142_v31  ;;  %3678 = vmatmul.mubr.f32.vlgmr.msra.gmra.mrb[24].mxu0 %v6769_v63  ;;  %v3789_v49 = vld [vmem:[%s6924_s8 + $0x68] sm:$0xff] }
 0xa0c   :  { %v3556_v35 = vrot.slane %v3542_v46, %v6142_v31  ;;  %v3560_v6 = vrot.slane %v3549_v30, %v6992_v21  ;;  %v5229_v46 = vpack.c.bf16 %v3789_v49, %v3788_v4  ;;  %v3806_v30 = vld [vmem:[%s6924_s8 + $0xf0] sm:$0xff] }
 0xa0e   :  { %v3564_v47 = vrot.slane %v3556_v35, %v6992_v21  ;;  %v3567_v7 = vmul.f32 %v3560_v6, %v3532_v54  ;;  %v5225_v54 = vpack.c.bf16 %v3787_v19, %v3786_v57  ;;  %v3807_v35 = vld [vmem:[%s6924_s8 + $0xf8] sm:$0xff] }
 0xa0f   :  { %v5231_v6 = vpack.c.bf16 %v3807_v35, %v3806_v30 }
 0xa10   :  { %v3568_v16 = vmul.f32 %v3564_v47, %v3533_v29  ;;  %3569 = vst [vmem:[%s6928_s12] sm:$0xff] %v3567_v7  ;;  %v5227_v29 = vpack.c.bf16 %v3805_v52, %v3804_v1  ;;  %v3790_v47 = vld [vmem:[%s6924_s8 + $0x70] sm:$0xff]  ;;  %v3791_v7 = vld [vmem:[%s6924_s8 + $0x78] sm:$0xff] }
 0xa12   :  { %3570 = vst [vmem:[%s6928_s12 + $0x8] sm:$0xff] %v3568_v16  ;;  %v5233_v16 = vpack.c.bf16 %v3791_v7, %v3790_v47 }
 0xadd   :  { %v4149_v13 = vpop.f32.mrb[24].mxu0 }
 0xade   :  { %v4150_v25 = vpop.f32.mrb[25].mxu0 }
 0xadf   :  { %v4151_v38 = vadd.f32 %v4150_v25, %v4149_v13 }
 0xae1   :  { %v3680_v22 = vadd.f32 %v4151_v38, %v3611_v33 }
 0xae3   :  { %5395 = vtanh.f32 %v3680_v22 }
 0xaed   :  { %v5396_v31 = vpop.eup %5395 }
 0xaee   :  { %v3684_v14 = vmul.f32 1.442695, %v5396_v31 }
 0xaf0   :  { %5397 = vpow2.f32 %v3684_v14 }
 0xafa   :  { %v5398_v21 = vpop.eup %5397 }
 0xafb   :  { %v3687_v27 = vsel %vm3686_vm9, %v5398_v21, 0.0 }
 0xafc   :  { %3688 = vadd.xlane.f32.xlu0 %v3687_v27 }
 0xb89   :  { %v3689_v2 = vpop.xlane.xlu0 %3688 }
 0xb8a   :  { %5399 = vrcp.f32 %v3689_v2 }
 0xb94   :  { %v5400_v43 = vpop.eup %5399 }
 0xb95   :  { %v3691_v55 = vmul.f32 %v5400_v43, %v5398_v21 }
 0xb97   :  { %3692 = vst.msk [vmem:[#allocation7] sm:$0x3] %vm3686_vm9, %v3691_v55  ;;  %3979 = vmatmul.mubr.msk.f32.vlgmr.msra.gmra.mrb[24].mxu1 %vm317_vm1, %v3691_v55 }
 0xb98   :  { %5206 = vmatpush3.bf16.msra.mxu1 %v5205_v50 }
 0xb99   :  { %5208 = vmatprep.subr.bf16.mxu1 %v5207_v60 }
 0xb9c   :  { %5210 = vmatpush3.bf16.msra.mxu1 %v5209_v44 }
 0xb9d   :  { %5212 = vmatprep.subr.bf16.mxu1 %v5211_v61 }
 0xba0   :  { %5214 = vmatpush3.bf16.msra.mxu1 %v5213_v59 }
 0xba1   :  { %5216 = vmatprep.subr.bf16.mxu1 %v5215_v12 }
 0xba4   :  { %5218 = vmatpush3.bf16.msra.mxu1 %v5217_v17 }
 0xba5   :  { %5220 = vmatprep.subr.bf16.mxu1 %v5219_v18 }
 0xba8   :  { %5222 = vmatpush3.bf16.msra.mxu1 %v5221_v41 }
 0xba9   :  { %5224 = vmatprep.subr.bf16.mxu1 %v5223_v3 }
 0xbac   :  { %5226 = vmatpush3.bf16.msra.mxu1 %v5225_v54 }
 0xbad   :  { %5228 = vmatprep.subr.bf16.mxu1 %v5227_v29 }
 0xbb0   :  { %5230 = vmatpush3.bf16.msra.mxu1 %v5229_v46 }
 0xbb1   :  { %5232 = vmatprep.subr.bf16.mxu1 %v5231_v6 }
 0xbb4   :  { %5234 = vmatpush3.bf16.msra.mxu1 %v5233_v16 }
 0xc6a   :  { %v3769_v13 = vpop.f32.mrb[24].mxu1 }
 0xc6b   :  { %v3771_v25 = vpop.f32.mrb[25].mxu1  ;;  %v3774_v38 = vmul.f32 %v3769_v13, %v6769_v63 }
 0xc6c   :  { %v3775_v33 = vmul.f32 %v3771_v25, %v6657_v28 }
 0xc6e   :  { %3879 = vmatprep.mubr.f32.mxu1 %v3775_v33 }
 0xc6f   :  { %3880 = vmatmul.mubr.f32.vlgmr.msra.gmra.mrb[26].mxu1 %v3774_v38 }
 0xc70   :  { %5437 = shalt.err (!%p5434_p12)
}
 0xc71   :  { %s5438_s30 = scalar_lea.hbm %s6929_s13, 32 }
 0xc72   :  { %p5439_p13 = scmp.ne.s32.totalorder %s6929_s13, %s5438_s30  ;;  %p5442_p0 = scmp.lt.u32.totalorder %s5438_s30, %s6929_s13 }
 0xc74   :  { %p5444_p1 = pnand %p5442_p0, %p5439_p13 }
 0xc76   :  { %5447 = shalt.err (!%p5444_p1)
}
 0xc77   :  { %3908 = dma.vmem_to_hbm [thread:$0]  %s3906_s29, 32, %s6929_s13, [#allocation8]   ;;  %v3980_v63 = vld [vmem:[%s6925_s9] ss:$0 sm:$0xff]  ;;  %vm3885_vm10 = vcmask 9216  }
 0xc78   :  { %s5485_s20 = smov [#allocation6]  }
 0xc79   :  { %s3893_s1 = sshll.u32 %s5485_s20, 4  ;;  %s3894_s1 = int_to_ptr.vmem [resolvable:$true] %s3893_s1 }
 0xc7a   :  { %s5448_s21 = scalar_lea.vmem %s3894_s1, 32  ;;  %p5453_p3 = scmp.lt.s32.totalorder %s3894_s1, %s3894_s1 }
 0xc7b   :  { %p5449_p2 = scmp.ne.s32.totalorder %s3894_s1, %s5448_s21  ;;  %p5454_p4 = scmp.lt.s32.totalorder %s5448_s21, %s5448_s21 }
 0xc7d   :  { %p5455_p5 = por %p5454_p4, %p5453_p3 }
 0xc7f   :  { %p5456_p6 = pnand %p5455_p5, %p5449_p2 }
 0xd42   :  { %v4184_v28 = vpop.f32.mrb[26].mxu1 }
 0xd43   :  { %v4185_v22 = vpop.f32.mrb[27].mxu1 }
 0xd44   :  { %v4186_v31 = vadd.f32 %v4185_v22, %v4184_v28 }
 0xd46   :  { %v3882_v14 = vadd.f32 %v4186_v31, %v3980_v63 }
 0xd48   :  { %3886 = vst.msk [vmem:[#allocation6] sm:$0x3] %vm3885_vm10, %v3882_v14 }
 0xd49   :  { %5459 = shalt.err (!%p5456_p6)
}
 0xd4a   :  { %s5460_s12 = scalar_lea.hbm %s6927_s11, 32 }
 0xd4b   :  { %p5461_p7 = scmp.ne.s32.totalorder %s6927_s11, %s5460_s12  ;;  %p5464_p8 = scmp.lt.u32.totalorder %s5460_s12, %s6927_s11 }
 0xd4d   :  { %p5466_p9 = pnand %p5464_p8, %p5461_p7 }
 0xd4f   :  { %5469 = shalt.err (!%p5466_p9)
}
 0xd50   :  { %3896 = dma.vmem_to_hbm [thread:$0]  %s3894_s1, 32, %s6927_s11, [#allocation5]  }
 0xd51   :  { %5472 = dma.done.wait [#allocation5], 32  }
 0xd52   :  { %5473 = vsyncadd [#allocation5], 4294967264 }
 0xd53   :  { %5474 = dma.done.wait [#allocation8], 32  }
 0xd54   :  { %5475 = vsyncadd [#allocation8], 4294967264 }
 0xd55   :  { %3917 = vsyncpa [#allocation4], 1 }
 0xd56   :  { %3918 = vsyncpa [#allocation5], 1 }
 0xd57   :  { %3919 = vsyncpa [#allocation8], 1 }

</bundles_post_ra>
